<compile_context>
chip_gen: v7x
topology: tpu7x:2x2x1
jax: 0.10.0
libtpu: 0.0.40
codegen_flags: <defaults>
</compile_context>

<pallas_src>
import functools

import jax
import jax.numpy as jnp
import numpy as np
from jax.experimental import pallas as pl
from jax.experimental.pallas import tpu as pltpu


def _decoder_kernel(zh_ref, w_pro_ref, b_pro_ref, w_mu_gates_ref,
                    w_comb_ref, b_comb_ref, out_ref, *,
                    horizon, dec_dim, num_chunks):
    H = dec_dim
    zh = zh_ref[...]                                   # (bt, D)
    bt = zh.shape[0]
    cs = bt // num_chunks

    # Hoist all weight reads out of the (statically unrolled) recurrence.
    w_comb = w_comb_ref[...]                           # (H, 3H+6)
    b_comb = b_comb_ref[...]                           # (1, 3H+6)
    w_mu0 = w_mu_gates_ref[0:1, :]                     # (1, 3H)  mu_x row
    w_mu1 = w_mu_gates_ref[1:2, :]                     # (1, 3H)  mu_y row

    # Fused prologue: [h0 | gi_r_x | gi_z_x | gi_n_x | comb0]     (bt, 7H+6)
    pro = jnp.dot(zh, w_pro_ref[...],
                  preferred_element_type=jnp.float32) + b_pro_ref[...]

    # Per-column clamp bounds for the per-step slab [mu_x, mu_y, cx, cxy, cxy, cy];
    # mu columns pass through via +-inf bounds.
    col6 = jax.lax.broadcasted_iota(jnp.int32, (1, 6), 1)
    is_mu = col6 < 2
    is_diag = (col6 == 2) | (col6 == 5)
    lo = jnp.where(is_mu, -jnp.inf,
                   jnp.where(is_diag, 0.2, -0.1)).astype(jnp.float32)
    hi = jnp.where(is_mu, jnp.inf,
                   jnp.where(is_diag, 1.0, 0.1)).astype(jnp.float32)

    # Per-chunk recurrence state: independent dependency chains the scheduler can
    # interleave (chunk B's matmul push overlaps chunk A's gate math).
    h, gi_x, comb, mu = [], [], [], []
    for c in range(num_chunks):
        pc = pro[c * cs:(c + 1) * cs]
        h.append(pc[:, :H])                            # h0
        gi_x.append(pc[:, H:4 * H])                    # loop-invariant input gates
        comb.append(pc[:, 4 * H:])                     # step-0 gates (heads unused)
        mu.append(jnp.zeros((cs, 2), jnp.float32))     # mu_t init = zeros

    for t in range(horizon):                           # static unroll (T small)
        for c in range(num_chunks):
            gh = comb[c][:, :3 * H]                    # hidden gates from h_t
            # mu_t contribution to the input gates on the VPU (two broadcast FMAs;
            # a K=2 MXU contraction would waste a full pass).
            gi = gi_x[c] + mu[c][:, 0:1] * w_mu0 + mu[c][:, 1:2] * w_mu1
            rz = jax.nn.sigmoid(gi[:, :2 * H] + gh[:, :2 * H])
            r = rz[:, :H]
            z = rz[:, H:]
            ng = jnp.tanh(gi[:, 2 * H:] + r * gh[:, 2 * H:])
            h[c] = (1.0 - z) * ng + z * h[c]

        for c in range(num_chunks):
            # ONE MXU push per chunk per step: next-step hidden gates plus the
            # mu/cov heads of the just-computed h.
            comb[c] = jnp.dot(h[c], w_comb,
                              preferred_element_type=jnp.float32) + b_comb

        for c in range(num_chunks):
            heads = comb[c][:, 3 * H:]                 # (cs, 6) = [mu(2), cov4(4)]
            mu[c] = heads[:, :2]
            out_ref[c * cs:(c + 1) * cs, 6 * t:6 * (t + 1)] = jnp.clip(heads, lo, hi)


def init_params(key, z_dim, h_m_dim, dec_dim):
    """Deterministic torch-style (uniform +-1/sqrt(fan_in)) parameter init."""
    D = z_dim + h_m_dim
    H = dec_dim
    ks = jax.random.split(key, 10)

    def unif(k, shape, bound):
        return jax.random.uniform(k, shape, jnp.float32, -bound, bound)

    kh = 1.0 / np.sqrt(D)
    kg = 1.0 / np.sqrt(H)
    return dict(
        h_init_w=unif(ks[0], (H, D), kh),          # nn.Linear(z+h_m, dec)
        h_init_b=unif(ks[1], (H,), kh),
        gru_w_ih=unif(ks[2], (3 * H, D + 2), kg),  # nn.GRUCell(z+h_m+2, dec)
        gru_w_hh=unif(ks[3], (3 * H, H), kg),
        gru_b_ih=unif(ks[4], (3 * H,), kg),
        gru_b_hh=unif(ks[5], (3 * H,), kg),
        mu_w=unif(ks[6], (2, H), kg),              # nn.Linear(dec, 2)
        mu_b=unif(ks[7], (2,), kg),
        cov_w=unif(ks[8], (3, H), kg),             # nn.Linear(dec, 3)
        cov_b=unif(ks[9], (3,), kg),
    )


def _pack_kernel_args(zh_m, p, dec_dim):
    """Host-side fusion of torch-layout weights into 6 kernel arrays."""
    D = zh_m.shape[1]
    H = dec_dim

    w_h = p["h_init_w"].T                          # (D, H)
    b_h = p["h_init_b"]                            # (H,)
    w_ih = p["gru_w_ih"].T                         # (D+2, 3H)  gate order r,z,n
    w_hh = p["gru_w_hh"].T                         # (H, 3H)

    # Combined per-step weight: h -> [gh_r | gh_z | gh_n | mu | cov4]  (H, 3H+6)
    idx = jnp.array([0, 1, 1, 2])
    w_heads = jnp.concatenate([p["mu_w"].T, p["cov_w"].T[:, idx]], axis=1)
    b_heads = jnp.concatenate([p["mu_b"], p["cov_b"][idx]])
    w_comb = jnp.concatenate([w_hh, w_heads], axis=1)          # (H, 3H+6)
    b_comb = jnp.concatenate([p["gru_b_hh"], b_heads])         # (3H+6,)

    # Fused prologue: zh -> [h0 | gi_r | gi_z | gi_n | comb0].  comb0 is folded
    # via (W_h @ W_comb) so the dependent pre-loop matmul disappears.  Host-side
    # pre-multiply at HIGHEST precision (one-time, off the critical chain).
    hp = jax.lax.Precision.HIGHEST
    w_h_comb = jnp.dot(w_h, w_comb, precision=hp)              # (D, 3H+6)
    b_h_comb = jnp.dot(b_h, w_comb, precision=hp) + b_comb     # (3H+6,)
    w_pro = jnp.concatenate([w_h, w_ih[:D], w_h_comb], axis=1)              # (D, 7H+6)
    b_pro = jnp.concatenate([b_h, p["gru_b_ih"], b_h_comb]).reshape(1, 7 * H + 6)

    # mu_t's (K=2) contribution to the input gates, applied on the VPU.
    w_mu_gates = w_ih[D:]                          # (2, 3H)

    return (zh_m, w_pro, b_pro, w_mu_gates, w_comb, b_comb.reshape(1, 3 * H + 6))


def _pick_batch_tile(n):
    """Largest comfortable batch tile (multiple of 8) -- at small N, no tiling."""
    if n <= 256:
        return n
    for t in (256, 128, 64, 32, 16, 8):
        if n % t == 0:
            return t
    return n


def future_trajectory_decoder(zh_m, params, dec_dim, horizon):
    N, D = zh_m.shape
    args = _pack_kernel_args(zh_m, params, dec_dim)

    bt = _pick_batch_tile(N)
    num_chunks = 2 if (bt >= 16 and bt % 16 == 0) else 1
    kernel = functools.partial(_decoder_kernel, horizon=horizon,
                               dec_dim=dec_dim, num_chunks=num_chunks)

    # Weights: same block (0, 0) for every grid step -> fetched once, resident.
    def pinned(arr):
        return pl.BlockSpec(arr.shape, lambda i: (0, 0))

    in_specs = ([pl.BlockSpec((bt, D), lambda i: (i, 0))]
                + [pinned(a) for a in args[1:]])
    out_specs = pl.BlockSpec((bt, horizon * 6), lambda i: (i, 0))

    out6 = pl.pallas_call(
        kernel,
        out_shape=jax.ShapeDtypeStruct((N, horizon * 6), jnp.float32),
        grid=(N // bt,),
        in_specs=in_specs,
        out_specs=out_specs,
        compiler_params=pltpu.CompilerParams(
            dimension_semantics=("parallel",)),
    )(*args)

    out6 = out6.reshape(N, horizon, 6)
    all_mu = out6[..., :2]                                      # (N, T, 2)
    all_cov = out6[..., 2:].reshape(N, horizon, 2, 2)           # (N, T, 2, 2)
    return all_mu, all_cov


def reference_forward(zh_m, p, dec_dim, horizon):
    """Pure-JAX transcription of the PyTorch forward (for verification)."""
    H = dec_dim
    N = zh_m.shape[0]
    h = zh_m @ p["h_init_w"].T + p["h_init_b"]
    mu = jnp.zeros((N, 2), jnp.float32)
    mus, covs = [], []
    for _ in range(horizon):
        x = jnp.concatenate([zh_m, mu], axis=1)
        gi = x @ p["gru_w_ih"].T + p["gru_b_ih"]
        gh = h @ p["gru_w_hh"].T + p["gru_b_hh"]
        r = jax.nn.sigmoid(gi[:, :H] + gh[:, :H])
        z = jax.nn.sigmoid(gi[:, H:2 * H] + gh[:, H:2 * H])
        n = jnp.tanh(gi[:, 2 * H:] + r * gh[:, 2 * H:])
        h = (1.0 - z) * n + z * h
        mu = h @ p["mu_w"].T + p["mu_b"]
        cov = h @ p["cov_w"].T + p["cov_b"]
        cx = jnp.clip(cov[:, 0], 0.2, 1.0)
        cxy = jnp.clip(cov[:, 1], -0.1, 0.1)
        cy = jnp.clip(cov[:, 2], 0.2, 1.0)
        fc = jnp.stack([cx, cxy, cxy, cy], axis=1).reshape(N, 2, 2)
        mus.append(mu[:, None, :])
        covs.append(fc[:, None])
    return jnp.concatenate(mus, axis=1), jnp.concatenate(covs, axis=1)


if __name__ == "__main__":
    z_dim, h_m_dim, dec_dim, horizon = 8, 24, 32, 8
    N = 16  # number of latent samples (zh_m.shape[0] in the torch code)

    key = jax.random.PRNGKey(0)
    k_x, k_p = jax.random.split(key)
    zh_m = jax.random.normal(k_x, (N, z_dim + h_m_dim), jnp.float32)
    params = init_params(k_p, z_dim, h_m_dim, dec_dim)

    all_mu, all_cov = future_trajectory_decoder(zh_m, params, dec_dim, horizon)
    all_mu, all_cov = jax.block_until_ready((all_mu, all_cov))

    ref_mu, ref_cov = reference_forward(zh_m, params, dec_dim, horizon)
    # Tolerance note: both kernel and reference run TPU-default (single bf16-pass)
    # matmuls, but the fused prologue reassociates comb0 = zh @ (W_h @ W_comb), so
    # bf16 truncation errors no longer cancel exactly between the two paths; the
    # resulting divergence is a few 1e-3 after 8 recurrent steps.
    np.testing.assert_allclose(np.asarray(all_mu), np.asarray(ref_mu),
                               rtol=2e-2, atol=2e-2)
    np.testing.assert_allclose(np.asarray(all_cov), np.asarray(ref_cov),
                               rtol=2e-2, atol=2e-2)
    assert all_mu.shape == (N, horizon, 2)
    assert all_cov.shape == (N, horizon, 2, 2)
    print("KERNEL_OK")
</pallas_src>

<mosaic_0001>
module attributes {stable_mosaic.version = 11 : i64} {
  func.func @_decoder_kernel(%arg0: i32, %arg1: memref<16x32xf32, #tpu.memory_space<vmem>>, %arg2: memref<32x230xf32, #tpu.memory_space<vmem>>, %arg3: memref<1x230xf32, #tpu.memory_space<vmem>>, %arg4: memref<2x96xf32, #tpu.memory_space<vmem>>, %arg5: memref<32x102xf32, #tpu.memory_space<vmem>>, %arg6: memref<1x102xf32, #tpu.memory_space<vmem>>, %arg7: memref<16x48xf32, #tpu.memory_space<vmem>>) attributes {dimension_semantics = [#tpu.dimension_semantics<parallel>], iteration_bounds = array<i64: 1>, scalar_prefetch = 0 : i64, scratch_operands = 0 : i64, tpu.core_type = #tpu.core_type<tc>, window_params = [{transform_indices = @transform_0, window_bounds = array<i64: 16, 32>}, {pipeline_mode = #tpu.pipeline_mode<synchronous>, transform_indices = @transform_1, window_bounds = array<i64: 32, 230>}, {pipeline_mode = #tpu.pipeline_mode<synchronous>, transform_indices = @transform_2, window_bounds = array<i64: 1, 230>}, {pipeline_mode = #tpu.pipeline_mode<synchronous>, transform_indices = @transform_3, window_bounds = array<i64: 2, 96>}, {pipeline_mode = #tpu.pipeline_mode<synchronous>, transform_indices = @transform_4, window_bounds = array<i64: 32, 102>}, {pipeline_mode = #tpu.pipeline_mode<synchronous>, transform_indices = @transform_5, window_bounds = array<i64: 1, 102>}, {transform_indices = @transform_6, window_bounds = array<i64: 16, 48>}]} {
    %c0 = arith.constant 0 : index
    %c0_0 = arith.constant 0 : index
    %0 = vector.load %arg1[%c0, %c0_0] : memref<16x32xf32, #tpu.memory_space<vmem>>, vector<16x32xf32>
    %c0_1 = arith.constant 0 : index
    %c0_2 = arith.constant 0 : index
    %1 = vector.load %arg5[%c0_1, %c0_2] : memref<32x102xf32, #tpu.memory_space<vmem>>, vector<32x102xf32>
    %c0_3 = arith.constant 0 : index
    %c0_4 = arith.constant 0 : index
    %2 = vector.load %arg6[%c0_3, %c0_4] : memref<1x102xf32, #tpu.memory_space<vmem>>, vector<1x102xf32>
    %c0_5 = arith.constant 0 : index
    %c0_6 = arith.constant 0 : index
    %3 = vector.load %arg4[%c0_5, %c0_6] : memref<2x96xf32, #tpu.memory_space<vmem>>, vector<1x96xf32>
    %c1 = arith.constant 1 : index
    %c0_7 = arith.constant 0 : index
    %4 = vector.load %arg4[%c1, %c0_7] : memref<2x96xf32, #tpu.memory_space<vmem>>, vector<1x96xf32>
    %c0_8 = arith.constant 0 : index
    %c0_9 = arith.constant 0 : index
    %5 = vector.load %arg2[%c0_8, %c0_9] : memref<32x230xf32, #tpu.memory_space<vmem>>, vector<32x230xf32>
    %cst = arith.constant dense<0.000000e+00> : vector<16x230xf32>
    %6 = tpu.matmul %0, %5, %cst {dimension_numbers = #tpu.dot_dimension_numbers<[1], [0], [0], [1], [0, 0, 1, 1], [], []>} : vector<16x32xf32>, vector<32x230xf32>, vector<16x230xf32> -> vector<16x230xf32>
    %c0_10 = arith.constant 0 : index
    %c0_11 = arith.constant 0 : index
    %7 = vector.load %arg3[%c0_10, %c0_11] : memref<1x230xf32, #tpu.memory_space<vmem>>, vector<1x230xf32>
    %8 = vector.broadcast %7 : vector<1x230xf32> to vector<16x230xf32>
    %9 = arith.addf %6, %8 : vector<16x230xf32>
    %10 = tpu.iota {dimensions = array<i32: 1>} : vector<1x6xi32>
    %c2_i32 = arith.constant 2 : i32
    %11 = vector.broadcast %c2_i32 : i32 to vector<1x6xi32>
    %12 = arith.cmpi slt, %10, %11 : vector<1x6xi32>
    %c2_i32_12 = arith.constant 2 : i32
    %13 = vector.broadcast %c2_i32_12 : i32 to vector<1x6xi32>
    %14 = arith.cmpi eq, %10, %13 : vector<1x6xi32>
    %c5_i32 = arith.constant 5 : i32
    %15 = vector.broadcast %c5_i32 : i32 to vector<1x6xi32>
    %16 = arith.cmpi eq, %10, %15 : vector<1x6xi32>
    %17 = arith.ori %14, %16 : vector<1x6xi1>
    %cst_13 = arith.constant 2.000000e-01 : f32
    %cst_14 = arith.constant -1.000000e-01 : f32
    %18 = vector.broadcast %cst_13 : f32 to vector<1x6xf32>
    %19 = vector.broadcast %cst_14 : f32 to vector<1x6xf32>
    %20 = arith.select %17, %18, %19 : vector<1x6xi1>, vector<1x6xf32>
    %cst_15 = arith.constant 0xFF800000 : f32
    %21 = vector.broadcast %cst_15 : f32 to vector<1x6xf32>
    %22 = arith.select %12, %21, %20 : vector<1x6xi1>, vector<1x6xf32>
    %cst_16 = arith.constant 1.000000e+00 : f32
    %cst_17 = arith.constant 1.000000e-01 : f32
    %23 = vector.broadcast %cst_16 : f32 to vector<1x6xf32>
    %24 = vector.broadcast %cst_17 : f32 to vector<1x6xf32>
    %25 = arith.select %17, %23, %24 : vector<1x6xi1>, vector<1x6xf32>
    %cst_18 = arith.constant 0x7F800000 : f32
    %26 = vector.broadcast %cst_18 : f32 to vector<1x6xf32>
    %27 = arith.select %12, %26, %25 : vector<1x6xi1>, vector<1x6xf32>
    %28 = vector.extract_strided_slice %9 {offsets = [0, 0], sizes = [8, 230], strides = [1, 1]} : vector<16x230xf32> to vector<8x230xf32>
    %29 = vector.extract_strided_slice %28 {offsets = [0, 0], sizes = [8, 32], strides = [1, 1]} : vector<8x230xf32> to vector<8x32xf32>
    %30 = vector.extract_strided_slice %28 {offsets = [0, 32], sizes = [8, 96], strides = [1, 1]} : vector<8x230xf32> to vector<8x96xf32>
    %31 = vector.extract_strided_slice %28 {offsets = [0, 128], sizes = [8, 102], strides = [1, 1]} : vector<8x230xf32> to vector<8x102xf32>
    %cst_19 = arith.constant 0.000000e+00 : f32
    %32 = vector.broadcast %cst_19 : f32 to vector<8x2xf32>
    %33 = vector.extract_strided_slice %9 {offsets = [8, 0], sizes = [8, 230], strides = [1, 1]} : vector<16x230xf32> to vector<8x230xf32>
    %34 = vector.extract_strided_slice %33 {offsets = [0, 0], sizes = [8, 32], strides = [1, 1]} : vector<8x230xf32> to vector<8x32xf32>
    %35 = vector.extract_strided_slice %33 {offsets = [0, 32], sizes = [8, 96], strides = [1, 1]} : vector<8x230xf32> to vector<8x96xf32>
    %36 = vector.extract_strided_slice %33 {offsets = [0, 128], sizes = [8, 102], strides = [1, 1]} : vector<8x230xf32> to vector<8x102xf32>
    %cst_20 = arith.constant 0.000000e+00 : f32
    %37 = vector.broadcast %cst_20 : f32 to vector<8x2xf32>
    %38 = vector.extract_strided_slice %31 {offsets = [0, 0], sizes = [8, 96], strides = [1, 1]} : vector<8x102xf32> to vector<8x96xf32>
    %39 = vector.extract_strided_slice %32 {offsets = [0, 0], sizes = [8, 1], strides = [1, 1]} : vector<8x2xf32> to vector<8x1xf32>
    %40 = vector.broadcast %39 : vector<8x1xf32> to vector<8x96xf32>
    %41 = vector.broadcast %3 : vector<1x96xf32> to vector<8x96xf32>
    %42 = arith.mulf %40, %41 : vector<8x96xf32>
    %43 = arith.addf %30, %42 : vector<8x96xf32>
    %44 = vector.extract_strided_slice %32 {offsets = [0, 1], sizes = [8, 1], strides = [1, 1]} : vector<8x2xf32> to vector<8x1xf32>
    %45 = vector.broadcast %44 : vector<8x1xf32> to vector<8x96xf32>
    %46 = vector.broadcast %4 : vector<1x96xf32> to vector<8x96xf32>
    %47 = arith.mulf %45, %46 : vector<8x96xf32>
    %48 = arith.addf %43, %47 : vector<8x96xf32>
    %49 = vector.extract_strided_slice %48 {offsets = [0, 0], sizes = [8, 64], strides = [1, 1]} : vector<8x96xf32> to vector<8x64xf32>
    %50 = vector.extract_strided_slice %38 {offsets = [0, 0], sizes = [8, 64], strides = [1, 1]} : vector<8x96xf32> to vector<8x64xf32>
    %51 = arith.addf %49, %50 : vector<8x64xf32>
    %52 = arith.negf %51 : vector<8x64xf32>
    %53 = math.exp %52 : vector<8x64xf32>
    %cst_21 = arith.constant 1.000000e+00 : f32
    %54 = vector.broadcast %cst_21 : f32 to vector<8x64xf32>
    %55 = arith.addf %54, %53 : vector<8x64xf32>
    %56 = arith.divf %54, %55 : vector<8x64xf32>
    %57 = vector.extract_strided_slice %56 {offsets = [0, 0], sizes = [8, 32], strides = [1, 1]} : vector<8x64xf32> to vector<8x32xf32>
    %58 = vector.extract_strided_slice %56 {offsets = [0, 32], sizes = [8, 32], strides = [1, 1]} : vector<8x64xf32> to vector<8x32xf32>
    %59 = vector.extract_strided_slice %48 {offsets = [0, 64], sizes = [8, 32], strides = [1, 1]} : vector<8x96xf32> to vector<8x32xf32>
    %60 = vector.extract_strided_slice %38 {offsets = [0, 64], sizes = [8, 32], strides = [1, 1]} : vector<8x96xf32> to vector<8x32xf32>
    %61 = arith.mulf %57, %60 : vector<8x32xf32>
    %62 = arith.addf %59, %61 : vector<8x32xf32>
    %63 = math.tanh %62 : vector<8x32xf32>
    %cst_22 = arith.constant 1.000000e+00 : f32
    %64 = vector.broadcast %cst_22 : f32 to vector<8x32xf32>
    %65 = arith.subf %64, %58 : vector<8x32xf32>
    %66 = arith.mulf %65, %63 : vector<8x32xf32>
    %67 = arith.mulf %58, %29 : vector<8x32xf32>
    %68 = arith.addf %66, %67 : vector<8x32xf32>
    %69 = vector.extract_strided_slice %36 {offsets = [0, 0], sizes = [8, 96], strides = [1, 1]} : vector<8x102xf32> to vector<8x96xf32>
    %70 = vector.extract_strided_slice %37 {offsets = [0, 0], sizes = [8, 1], strides = [1, 1]} : vector<8x2xf32> to vector<8x1xf32>
    %71 = vector.broadcast %70 : vector<8x1xf32> to vector<8x96xf32>
    %72 = vector.broadcast %3 : vector<1x96xf32> to vector<8x96xf32>
    %73 = arith.mulf %71, %72 : vector<8x96xf32>
    %74 = arith.addf %35, %73 : vector<8x96xf32>
    %75 = vector.extract_strided_slice %37 {offsets = [0, 1], sizes = [8, 1], strides = [1, 1]} : vector<8x2xf32> to vector<8x1xf32>
    %76 = vector.broadcast %75 : vector<8x1xf32> to vector<8x96xf32>
    %77 = vector.broadcast %4 : vector<1x96xf32> to vector<8x96xf32>
    %78 = arith.mulf %76, %77 : vector<8x96xf32>
    %79 = arith.addf %74, %78 : vector<8x96xf32>
    %80 = vector.extract_strided_slice %79 {offsets = [0, 0], sizes = [8, 64], strides = [1, 1]} : vector<8x96xf32> to vector<8x64xf32>
    %81 = vector.extract_strided_slice %69 {offsets = [0, 0], sizes = [8, 64], strides = [1, 1]} : vector<8x96xf32> to vector<8x64xf32>
    %82 = arith.addf %80, %81 : vector<8x64xf32>
    %83 = arith.negf %82 : vector<8x64xf32>
    %84 = math.exp %83 : vector<8x64xf32>
    %cst_23 = arith.constant 1.000000e+00 : f32
    %85 = vector.broadcast %cst_23 : f32 to vector<8x64xf32>
    %86 = arith.addf %85, %84 : vector<8x64xf32>
    %87 = arith.divf %85, %86 : vector<8x64xf32>
    %88 = vector.extract_strided_slice %87 {offsets = [0, 0], sizes = [8, 32], strides = [1, 1]} : vector<8x64xf32> to vector<8x32xf32>
    %89 = vector.extract_strided_slice %87 {offsets = [0, 32], sizes = [8, 32], strides = [1, 1]} : vector<8x64xf32> to vector<8x32xf32>
    %90 = vector.extract_strided_slice %79 {offsets = [0, 64], sizes = [8, 32], strides = [1, 1]} : vector<8x96xf32> to vector<8x32xf32>
    %91 = vector.extract_strided_slice %69 {offsets = [0, 64], sizes = [8, 32], strides = [1, 1]} : vector<8x96xf32> to vector<8x32xf32>
    %92 = arith.mulf %88, %91 : vector<8x32xf32>
    %93 = arith.addf %90, %92 : vector<8x32xf32>
    %94 = math.tanh %93 : vector<8x32xf32>
    %cst_24 = arith.constant 1.000000e+00 : f32
    %95 = vector.broadcast %cst_24 : f32 to vector<8x32xf32>
    %96 = arith.subf %95, %89 : vector<8x32xf32>
    %97 = arith.mulf %96, %94 : vector<8x32xf32>
    %98 = arith.mulf %89, %34 : vector<8x32xf32>
    %99 = arith.addf %97, %98 : vector<8x32xf32>
    %cst_25 = arith.constant dense<0.000000e+00> : vector<8x102xf32>
    %100 = tpu.matmul %68, %1, %cst_25 {dimension_numbers = #tpu.dot_dimension_numbers<[1], [0], [0], [1], [0, 0, 1, 1], [], []>} : vector<8x32xf32>, vector<32x102xf32>, vector<8x102xf32> -> vector<8x102xf32>
    %101 = vector.broadcast %2 : vector<1x102xf32> to vector<8x102xf32>
    %102 = arith.addf %100, %101 : vector<8x102xf32>
    %cst_26 = arith.constant dense<0.000000e+00> : vector<8x102xf32>
    %103 = tpu.matmul %99, %1, %cst_26 {dimension_numbers = #tpu.dot_dimension_numbers<[1], [0], [0], [1], [0, 0, 1, 1], [], []>} : vector<8x32xf32>, vector<32x102xf32>, vector<8x102xf32> -> vector<8x102xf32>
    %104 = vector.broadcast %2 : vector<1x102xf32> to vector<8x102xf32>
    %105 = arith.addf %103, %104 : vector<8x102xf32>
    %106 = vector.extract_strided_slice %102 {offsets = [0, 96], sizes = [8, 6], strides = [1, 1]} : vector<8x102xf32> to vector<8x6xf32>
    %107 = vector.extract_strided_slice %106 {offsets = [0, 0], sizes = [8, 2], strides = [1, 1]} : vector<8x6xf32> to vector<8x2xf32>
    %108 = vector.broadcast %22 : vector<1x6xf32> to vector<8x6xf32>
    %109 = arith.maximumf %108, %106 : vector<8x6xf32>
    %110 = vector.broadcast %27 : vector<1x6xf32> to vector<8x6xf32>
    %111 = arith.minimumf %110, %109 : vector<8x6xf32>
    %c0_27 = arith.constant 0 : index
    %c0_28 = arith.constant 0 : index
    %112 = vector.load %arg7[%c0_27, %c0_28] : memref<16x48xf32, #tpu.memory_space<vmem>>, vector<8x6xf32>
    tpu.vector_store %arg7[%c0_27, %c0_28], %111 {strides = array<i32>} : memref<16x48xf32, #tpu.memory_space<vmem>>, vector<8x6xf32>,
    %113 = vector.extract_strided_slice %105 {offsets = [0, 96], sizes = [8, 6], strides = [1, 1]} : vector<8x102xf32> to vector<8x6xf32>
    %114 = vector.extract_strided_slice %113 {offsets = [0, 0], sizes = [8, 2], strides = [1, 1]} : vector<8x6xf32> to vector<8x2xf32>
    %115 = vector.broadcast %22 : vector<1x6xf32> to vector<8x6xf32>
    %116 = arith.maximumf %115, %113 : vector<8x6xf32>
    %117 = vector.broadcast %27 : vector<1x6xf32> to vector<8x6xf32>
    %118 = arith.minimumf %117, %116 : vector<8x6xf32>
    %c8 = arith.constant 8 : index
    %c0_29 = arith.constant 0 : index
    %119 = vector.load %arg7[%c8, %c0_29] : memref<16x48xf32, #tpu.memory_space<vmem>>, vector<8x6xf32>
    tpu.vector_store %arg7[%c8, %c0_29], %118 {strides = array<i32>} : memref<16x48xf32, #tpu.memory_space<vmem>>, vector<8x6xf32>,
    %120 = vector.extract_strided_slice %102 {offsets = [0, 0], sizes = [8, 96], strides = [1, 1]} : vector<8x102xf32> to vector<8x96xf32>
    %121 = vector.extract_strided_slice %107 {offsets = [0, 0], sizes = [8, 1], strides = [1, 1]} : vector<8x2xf32> to vector<8x1xf32>
    %122 = vector.broadcast %121 : vector<8x1xf32> to vector<8x96xf32>
    %123 = vector.broadcast %3 : vector<1x96xf32> to vector<8x96xf32>
    %124 = arith.mulf %122, %123 : vector<8x96xf32>
    %125 = arith.addf %30, %124 : vector<8x96xf32>
    %126 = vector.extract_strided_slice %107 {offsets = [0, 1], sizes = [8, 1], strides = [1, 1]} : vector<8x2xf32> to vector<8x1xf32>
    %127 = vector.broadcast %126 : vector<8x1xf32> to vector<8x96xf32>
    %128 = vector.broadcast %4 : vector<1x96xf32> to vector<8x96xf32>
    %129 = arith.mulf %127, %128 : vector<8x96xf32>
    %130 = arith.addf %125, %129 : vector<8x96xf32>
    %131 = vector.extract_strided_slice %130 {offsets = [0, 0], sizes = [8, 64], strides = [1, 1]} : vector<8x96xf32> to vector<8x64xf32>
    %132 = vector.extract_strided_slice %120 {offsets = [0, 0], sizes = [8, 64], strides = [1, 1]} : vector<8x96xf32> to vector<8x64xf32>
    %133 = arith.addf %131, %132 : vector<8x64xf32>
    %134 = arith.negf %133 : vector<8x64xf32>
    %135 = math.exp %134 : vector<8x64xf32>
    %cst_30 = arith.constant 1.000000e+00 : f32
    %136 = vector.broadcast %cst_30 : f32 to vector<8x64xf32>
    %137 = arith.addf %136, %135 : vector<8x64xf32>
    %138 = arith.divf %136, %137 : vector<8x64xf32>
    %139 = vector.extract_strided_slice %138 {offsets = [0, 0], sizes = [8, 32], strides = [1, 1]} : vector<8x64xf32> to vector<8x32xf32>
    %140 = vector.extract_strided_slice %138 {offsets = [0, 32], sizes = [8, 32], strides = [1, 1]} : vector<8x64xf32> to vector<8x32xf32>
    %141 = vector.extract_strided_slice %130 {offsets = [0, 64], sizes = [8, 32], strides = [1, 1]} : vector<8x96xf32> to vector<8x32xf32>
    %142 = vector.extract_strided_slice %120 {offsets = [0, 64], sizes = [8, 32], strides = [1, 1]} : vector<8x96xf32> to vector<8x32xf32>
    %143 = arith.mulf %139, %142 : vector<8x32xf32>
    %144 = arith.addf %141, %143 : vector<8x32xf32>
    %145 = math.tanh %144 : vector<8x32xf32>
    %cst_31 = arith.constant 1.000000e+00 : f32
    %146 = vector.broadcast %cst_31 : f32 to vector<8x32xf32>
    %147 = arith.subf %146, %140 : vector<8x32xf32>
    %148 = arith.mulf %147, %145 : vector<8x32xf32>
    %149 = arith.mulf %140, %68 : vector<8x32xf32>
    %150 = arith.addf %148, %149 : vector<8x32xf32>
    %151 = vector.extract_strided_slice %105 {offsets = [0, 0], sizes = [8, 96], strides = [1, 1]} : vector<8x102xf32> to vector<8x96xf32>
    %152 = vector.extract_strided_slice %114 {offsets = [0, 0], sizes = [8, 1], strides = [1, 1]} : vector<8x2xf32> to vector<8x1xf32>
    %153 = vector.broadcast %152 : vector<8x1xf32> to vector<8x96xf32>
    %154 = vector.broadcast %3 : vector<1x96xf32> to vector<8x96xf32>
    %155 = arith.mulf %153, %154 : vector<8x96xf32>
    %156 = arith.addf %35, %155 : vector<8x96xf32>
    %157 = vector.extract_strided_slice %114 {offsets = [0, 1], sizes = [8, 1], strides = [1, 1]} : vector<8x2xf32> to vector<8x1xf32>
    %158 = vector.broadcast %157 : vector<8x1xf32> to vector<8x96xf32>
    %159 = vector.broadcast %4 : vector<1x96xf32> to vector<8x96xf32>
    %160 = arith.mulf %158, %159 : vector<8x96xf32>
    %161 = arith.addf %156, %160 : vector<8x96xf32>
    %162 = vector.extract_strided_slice %161 {offsets = [0, 0], sizes = [8, 64], strides = [1, 1]} : vector<8x96xf32> to vector<8x64xf32>
    %163 = vector.extract_strided_slice %151 {offsets = [0, 0], sizes = [8, 64], strides = [1, 1]} : vector<8x96xf32> to vector<8x64xf32>
    %164 = arith.addf %162, %163 : vector<8x64xf32>
    %165 = arith.negf %164 : vector<8x64xf32>
    %166 = math.exp %165 : vector<8x64xf32>
    %cst_32 = arith.constant 1.000000e+00 : f32
    %167 = vector.broadcast %cst_32 : f32 to vector<8x64xf32>
    %168 = arith.addf %167, %166 : vector<8x64xf32>
    %169 = arith.divf %167, %168 : vector<8x64xf32>
    %170 = vector.extract_strided_slice %169 {offsets = [0, 0], sizes = [8, 32], strides = [1, 1]} : vector<8x64xf32> to vector<8x32xf32>
    %171 = vector.extract_strided_slice %169 {offsets = [0, 32], sizes = [8, 32], strides = [1, 1]} : vector<8x64xf32> to vector<8x32xf32>
    %172 = vector.extract_strided_slice %161 {offsets = [0, 64], sizes = [8, 32], strides = [1, 1]} : vector<8x96xf32> to vector<8x32xf32>
    %173 = vector.extract_strided_slice %151 {offsets = [0, 64], sizes = [8, 32], strides = [1, 1]} : vector<8x96xf32> to vector<8x32xf32>
    %174 = arith.mulf %170, %173 : vector<8x32xf32>
    %175 = arith.addf %172, %174 : vector<8x32xf32>
    %176 = math.tanh %175 : vector<8x32xf32>
    %cst_33 = arith.constant 1.000000e+00 : f32
    %177 = vector.broadcast %cst_33 : f32 to vector<8x32xf32>
    %178 = arith.subf %177, %171 : vector<8x32xf32>
    %179 = arith.mulf %178, %176 : vector<8x32xf32>
    %180 = arith.mulf %171, %99 : vector<8x32xf32>
    %181 = arith.addf %179, %180 : vector<8x32xf32>
    %cst_34 = arith.constant dense<0.000000e+00> : vector<8x102xf32>
    %182 = tpu.matmul %150, %1, %cst_34 {dimension_numbers = #tpu.dot_dimension_numbers<[1], [0], [0], [1], [0, 0, 1, 1], [], []>} : vector<8x32xf32>, vector<32x102xf32>, vector<8x102xf32> -> vector<8x102xf32>
    %183 = vector.broadcast %2 : vector<1x102xf32> to vector<8x102xf32>
    %184 = arith.addf %182, %183 : vector<8x102xf32>
    %cst_35 = arith.constant dense<0.000000e+00> : vector<8x102xf32>
    %185 = tpu.matmul %181, %1, %cst_35 {dimension_numbers = #tpu.dot_dimension_numbers<[1], [0], [0], [1], [0, 0, 1, 1], [], []>} : vector<8x32xf32>, vector<32x102xf32>, vector<8x102xf32> -> vector<8x102xf32>
    %186 = vector.broadcast %2 : vector<1x102xf32> to vector<8x102xf32>
    %187 = arith.addf %185, %186 : vector<8x102xf32>
    %188 = vector.extract_strided_slice %184 {offsets = [0, 96], sizes = [8, 6], strides = [1, 1]} : vector<8x102xf32> to vector<8x6xf32>
    %189 = vector.extract_strided_slice %188 {offsets = [0, 0], sizes = [8, 2], strides = [1, 1]} : vector<8x6xf32> to vector<8x2xf32>
    %190 = vector.broadcast %22 : vector<1x6xf32> to vector<8x6xf32>
    %191 = arith.maximumf %190, %188 : vector<8x6xf32>
    %192 = vector.broadcast %27 : vector<1x6xf32> to vector<8x6xf32>
    %193 = arith.minimumf %192, %191 : vector<8x6xf32>
    %c0_36 = arith.constant 0 : index
    %c6 = arith.constant 6 : index
    %194 = vector.load %arg7[%c0_36, %c6] : memref<16x48xf32, #tpu.memory_space<vmem>>, vector<8x6xf32>
    tpu.vector_store %arg7[%c0_36, %c6], %193 {strides = array<i32>} : memref<16x48xf32, #tpu.memory_space<vmem>>, vector<8x6xf32>,
    %195 = vector.extract_strided_slice %187 {offsets = [0, 96], sizes = [8, 6], strides = [1, 1]} : vector<8x102xf32> to vector<8x6xf32>
    %196 = vector.extract_strided_slice %195 {offsets = [0, 0], sizes = [8, 2], strides = [1, 1]} : vector<8x6xf32> to vector<8x2xf32>
    %197 = vector.broadcast %22 : vector<1x6xf32> to vector<8x6xf32>
    %198 = arith.maximumf %197, %195 : vector<8x6xf32>
    %199 = vector.broadcast %27 : vector<1x6xf32> to vector<8x6xf32>
    %200 = arith.minimumf %199, %198 : vector<8x6xf32>
    %c8_37 = arith.constant 8 : index
    %c6_38 = arith.constant 6 : index
    %201 = vector.load %arg7[%c8_37, %c6_38] : memref<16x48xf32, #tpu.memory_space<vmem>>, vector<8x6xf32>
    tpu.vector_store %arg7[%c8_37, %c6_38], %200 {strides = array<i32>} : memref<16x48xf32, #tpu.memory_space<vmem>>, vector<8x6xf32>,
    %202 = vector.extract_strided_slice %184 {offsets = [0, 0], sizes = [8, 96], strides = [1, 1]} : vector<8x102xf32> to vector<8x96xf32>
    %203 = vector.extract_strided_slice %189 {offsets = [0, 0], sizes = [8, 1], strides = [1, 1]} : vector<8x2xf32> to vector<8x1xf32>
    %204 = vector.broadcast %203 : vector<8x1xf32> to vector<8x96xf32>
    %205 = vector.broadcast %3 : vector<1x96xf32> to vector<8x96xf32>
    %206 = arith.mulf %204, %205 : vector<8x96xf32>
    %207 = arith.addf %30, %206 : vector<8x96xf32>
    %208 = vector.extract_strided_slice %189 {offsets = [0, 1], sizes = [8, 1], strides = [1, 1]} : vector<8x2xf32> to vector<8x1xf32>
    %209 = vector.broadcast %208 : vector<8x1xf32> to vector<8x96xf32>
    %210 = vector.broadcast %4 : vector<1x96xf32> to vector<8x96xf32>
    %211 = arith.mulf %209, %210 : vector<8x96xf32>
    %212 = arith.addf %207, %211 : vector<8x96xf32>
    %213 = vector.extract_strided_slice %212 {offsets = [0, 0], sizes = [8, 64], strides = [1, 1]} : vector<8x96xf32> to vector<8x64xf32>
    %214 = vector.extract_strided_slice %202 {offsets = [0, 0], sizes = [8, 64], strides = [1, 1]} : vector<8x96xf32> to vector<8x64xf32>
    %215 = arith.addf %213, %214 : vector<8x64xf32>
    %216 = arith.negf %215 : vector<8x64xf32>
    %217 = math.exp %216 : vector<8x64xf32>
    %cst_39 = arith.constant 1.000000e+00 : f32
    %218 = vector.broadcast %cst_39 : f32 to vector<8x64xf32>
    %219 = arith.addf %218, %217 : vector<8x64xf32>
    %220 = arith.divf %218, %219 : vector<8x64xf32>
    %221 = vector.extract_strided_slice %220 {offsets = [0, 0], sizes = [8, 32], strides = [1, 1]} : vector<8x64xf32> to vector<8x32xf32>
    %222 = vector.extract_strided_slice %220 {offsets = [0, 32], sizes = [8, 32], strides = [1, 1]} : vector<8x64xf32> to vector<8x32xf32>
    %223 = vector.extract_strided_slice %212 {offsets = [0, 64], sizes = [8, 32], strides = [1, 1]} : vector<8x96xf32> to vector<8x32xf32>
    %224 = vector.extract_strided_slice %202 {offsets = [0, 64], sizes = [8, 32], strides = [1, 1]} : vector<8x96xf32> to vector<8x32xf32>
    %225 = arith.mulf %221, %224 : vector<8x32xf32>
    %226 = arith.addf %223, %225 : vector<8x32xf32>
    %227 = math.tanh %226 : vector<8x32xf32>
    %cst_40 = arith.constant 1.000000e+00 : f32
    %228 = vector.broadcast %cst_40 : f32 to vector<8x32xf32>
    %229 = arith.subf %228, %222 : vector<8x32xf32>
    %230 = arith.mulf %229, %227 : vector<8x32xf32>
    %231 = arith.mulf %222, %150 : vector<8x32xf32>
    %232 = arith.addf %230, %231 : vector<8x32xf32>
    %233 = vector.extract_strided_slice %187 {offsets = [0, 0], sizes = [8, 96], strides = [1, 1]} : vector<8x102xf32> to vector<8x96xf32>
    %234 = vector.extract_strided_slice %196 {offsets = [0, 0], sizes = [8, 1], strides = [1, 1]} : vector<8x2xf32> to vector<8x1xf32>
    %235 = vector.broadcast %234 : vector<8x1xf32> to vector<8x96xf32>
    %236 = vector.broadcast %3 : vector<1x96xf32> to vector<8x96xf32>
    %237 = arith.mulf %235, %236 : vector<8x96xf32>
    %238 = arith.addf %35, %237 : vector<8x96xf32>
    %239 = vector.extract_strided_slice %196 {offsets = [0, 1], sizes = [8, 1], strides = [1, 1]} : vector<8x2xf32> to vector<8x1xf32>
    %240 = vector.broadcast %239 : vector<8x1xf32> to vector<8x96xf32>
    %241 = vector.broadcast %4 : vector<1x96xf32> to vector<8x96xf32>
    %242 = arith.mulf %240, %241 : vector<8x96xf32>
    %243 = arith.addf %238, %242 : vector<8x96xf32>
    %244 = vector.extract_strided_slice %243 {offsets = [0, 0], sizes = [8, 64], strides = [1, 1]} : vector<8x96xf32> to vector<8x64xf32>
    %245 = vector.extract_strided_slice %233 {offsets = [0, 0], sizes = [8, 64], strides = [1, 1]} : vector<8x96xf32> to vector<8x64xf32>
    %246 = arith.addf %244, %245 : vector<8x64xf32>
    %247 = arith.negf %246 : vector<8x64xf32>
    %248 = math.exp %247 : vector<8x64xf32>
    %cst_41 = arith.constant 1.000000e+00 : f32
    %249 = vector.broadcast %cst_41 : f32 to vector<8x64xf32>
    %250 = arith.addf %249, %248 : vector<8x64xf32>
    %251 = arith.divf %249, %250 : vector<8x64xf32>
    %252 = vector.extract_strided_slice %251 {offsets = [0, 0], sizes = [8, 32], strides = [1, 1]} : vector<8x64xf32> to vector<8x32xf32>
    %253 = vector.extract_strided_slice %251 {offsets = [0, 32], sizes = [8, 32], strides = [1, 1]} : vector<8x64xf32> to vector<8x32xf32>
    %254 = vector.extract_strided_slice %243 {offsets = [0, 64], sizes = [8, 32], strides = [1, 1]} : vector<8x96xf32> to vector<8x32xf32>
    %255 = vector.extract_strided_slice %233 {offsets = [0, 64], sizes = [8, 32], strides = [1, 1]} : vector<8x96xf32> to vector<8x32xf32>
    %256 = arith.mulf %252, %255 : vector<8x32xf32>
    %257 = arith.addf %254, %256 : vector<8x32xf32>
    %258 = math.tanh %257 : vector<8x32xf32>
    %cst_42 = arith.constant 1.000000e+00 : f32
    %259 = vector.broadcast %cst_42 : f32 to vector<8x32xf32>
    %260 = arith.subf %259, %253 : vector<8x32xf32>
    %261 = arith.mulf %260, %258 : vector<8x32xf32>
    %262 = arith.mulf %253, %181 : vector<8x32xf32>
    %263 = arith.addf %261, %262 : vector<8x32xf32>
    %cst_43 = arith.constant dense<0.000000e+00> : vector<8x102xf32>
    %264 = tpu.matmul %232, %1, %cst_43 {dimension_numbers = #tpu.dot_dimension_numbers<[1], [0], [0], [1], [0, 0, 1, 1], [], []>} : vector<8x32xf32>, vector<32x102xf32>, vector<8x102xf32> -> vector<8x102xf32>
    %265 = vector.broadcast %2 : vector<1x102xf32> to vector<8x102xf32>
    %266 = arith.addf %264, %265 : vector<8x102xf32>
    %cst_44 = arith.constant dense<0.000000e+00> : vector<8x102xf32>
    %267 = tpu.matmul %263, %1, %cst_44 {dimension_numbers = #tpu.dot_dimension_numbers<[1], [0], [0], [1], [0, 0, 1, 1], [], []>} : vector<8x32xf32>, vector<32x102xf32>, vector<8x102xf32> -> vector<8x102xf32>
    %268 = vector.broadcast %2 : vector<1x102xf32> to vector<8x102xf32>
    %269 = arith.addf %267, %268 : vector<8x102xf32>
    %270 = vector.extract_strided_slice %266 {offsets = [0, 96], sizes = [8, 6], strides = [1, 1]} : vector<8x102xf32> to vector<8x6xf32>
    %271 = vector.extract_strided_slice %270 {offsets = [0, 0], sizes = [8, 2], strides = [1, 1]} : vector<8x6xf32> to vector<8x2xf32>
    %272 = vector.broadcast %22 : vector<1x6xf32> to vector<8x6xf32>
    %273 = arith.maximumf %272, %270 : vector<8x6xf32>
    %274 = vector.broadcast %27 : vector<1x6xf32> to vector<8x6xf32>
    %275 = arith.minimumf %274, %273 : vector<8x6xf32>
    %c0_45 = arith.constant 0 : index
    %c12 = arith.constant 12 : index
    %276 = vector.load %arg7[%c0_45, %c12] : memref<16x48xf32, #tpu.memory_space<vmem>>, vector<8x6xf32>
    tpu.vector_store %arg7[%c0_45, %c12], %275 {strides = array<i32>} : memref<16x48xf32, #tpu.memory_space<vmem>>, vector<8x6xf32>,
    %277 = vector.extract_strided_slice %269 {offsets = [0, 96], sizes = [8, 6], strides = [1, 1]} : vector<8x102xf32> to vector<8x6xf32>
    %278 = vector.extract_strided_slice %277 {offsets = [0, 0], sizes = [8, 2], strides = [1, 1]} : vector<8x6xf32> to vector<8x2xf32>
    %279 = vector.broadcast %22 : vector<1x6xf32> to vector<8x6xf32>
    %280 = arith.maximumf %279, %277 : vector<8x6xf32>
    %281 = vector.broadcast %27 : vector<1x6xf32> to vector<8x6xf32>
    %282 = arith.minimumf %281, %280 : vector<8x6xf32>
    %c8_46 = arith.constant 8 : index
    %c12_47 = arith.constant 12 : index
    %283 = vector.load %arg7[%c8_46, %c12_47] : memref<16x48xf32, #tpu.memory_space<vmem>>, vector<8x6xf32>
    tpu.vector_store %arg7[%c8_46, %c12_47], %282 {strides = array<i32>} : memref<16x48xf32, #tpu.memory_space<vmem>>, vector<8x6xf32>,
    %284 = vector.extract_strided_slice %266 {offsets = [0, 0], sizes = [8, 96], strides = [1, 1]} : vector<8x102xf32> to vector<8x96xf32>
    %285 = vector.extract_strided_slice %271 {offsets = [0, 0], sizes = [8, 1], strides = [1, 1]} : vector<8x2xf32> to vector<8x1xf32>
    %286 = vector.broadcast %285 : vector<8x1xf32> to vector<8x96xf32>
    %287 = vector.broadcast %3 : vector<1x96xf32> to vector<8x96xf32>
    %288 = arith.mulf %286, %287 : vector<8x96xf32>
    %289 = arith.addf %30, %288 : vector<8x96xf32>
    %290 = vector.extract_strided_slice %271 {offsets = [0, 1], sizes = [8, 1], strides = [1, 1]} : vector<8x2xf32> to vector<8x1xf32>
    %291 = vector.broadcast %290 : vector<8x1xf32> to vector<8x96xf32>
    %292 = vector.broadcast %4 : vector<1x96xf32> to vector<8x96xf32>
    %293 = arith.mulf %291, %292 : vector<8x96xf32>
    %294 = arith.addf %289, %293 : vector<8x96xf32>
    %295 = vector.extract_strided_slice %294 {offsets = [0, 0], sizes = [8, 64], strides = [1, 1]} : vector<8x96xf32> to vector<8x64xf32>
    %296 = vector.extract_strided_slice %284 {offsets = [0, 0], sizes = [8, 64], strides = [1, 1]} : vector<8x96xf32> to vector<8x64xf32>
    %297 = arith.addf %295, %296 : vector<8x64xf32>
    %298 = arith.negf %297 : vector<8x64xf32>
    %299 = math.exp %298 : vector<8x64xf32>
    %cst_48 = arith.constant 1.000000e+00 : f32
    %300 = vector.broadcast %cst_48 : f32 to vector<8x64xf32>
    %301 = arith.addf %300, %299 : vector<8x64xf32>
    %302 = arith.divf %300, %301 : vector<8x64xf32>
    %303 = vector.extract_strided_slice %302 {offsets = [0, 0], sizes = [8, 32], strides = [1, 1]} : vector<8x64xf32> to vector<8x32xf32>
    %304 = vector.extract_strided_slice %302 {offsets = [0, 32], sizes = [8, 32], strides = [1, 1]} : vector<8x64xf32> to vector<8x32xf32>
    %305 = vector.extract_strided_slice %294 {offsets = [0, 64], sizes = [8, 32], strides = [1, 1]} : vector<8x96xf32> to vector<8x32xf32>
    %306 = vector.extract_strided_slice %284 {offsets = [0, 64], sizes = [8, 32], strides = [1, 1]} : vector<8x96xf32> to vector<8x32xf32>
    %307 = arith.mulf %303, %306 : vector<8x32xf32>
    %308 = arith.addf %305, %307 : vector<8x32xf32>
    %309 = math.tanh %308 : vector<8x32xf32>
    %cst_49 = arith.constant 1.000000e+00 : f32
    %310 = vector.broadcast %cst_49 : f32 to vector<8x32xf32>
    %311 = arith.subf %310, %304 : vector<8x32xf32>
    %312 = arith.mulf %311, %309 : vector<8x32xf32>
    %313 = arith.mulf %304, %232 : vector<8x32xf32>
    %314 = arith.addf %312, %313 : vector<8x32xf32>
    %315 = vector.extract_strided_slice %269 {offsets = [0, 0], sizes = [8, 96], strides = [1, 1]} : vector<8x102xf32> to vector<8x96xf32>
    %316 = vector.extract_strided_slice %278 {offsets = [0, 0], sizes = [8, 1], strides = [1, 1]} : vector<8x2xf32> to vector<8x1xf32>
    %317 = vector.broadcast %316 : vector<8x1xf32> to vector<8x96xf32>
    %318 = vector.broadcast %3 : vector<1x96xf32> to vector<8x96xf32>
    %319 = arith.mulf %317, %318 : vector<8x96xf32>
    %320 = arith.addf %35, %319 : vector<8x96xf32>
    %321 = vector.extract_strided_slice %278 {offsets = [0, 1], sizes = [8, 1], strides = [1, 1]} : vector<8x2xf32> to vector<8x1xf32>
    %322 = vector.broadcast %321 : vector<8x1xf32> to vector<8x96xf32>
    %323 = vector.broadcast %4 : vector<1x96xf32> to vector<8x96xf32>
    %324 = arith.mulf %322, %323 : vector<8x96xf32>
    %325 = arith.addf %320, %324 : vector<8x96xf32>
    %326 = vector.extract_strided_slice %325 {offsets = [0, 0], sizes = [8, 64], strides = [1, 1]} : vector<8x96xf32> to vector<8x64xf32>
    %327 = vector.extract_strided_slice %315 {offsets = [0, 0], sizes = [8, 64], strides = [1, 1]} : vector<8x96xf32> to vector<8x64xf32>
    %328 = arith.addf %326, %327 : vector<8x64xf32>
    %329 = arith.negf %328 : vector<8x64xf32>
    %330 = math.exp %329 : vector<8x64xf32>
    %cst_50 = arith.constant 1.000000e+00 : f32
    %331 = vector.broadcast %cst_50 : f32 to vector<8x64xf32>
    %332 = arith.addf %331, %330 : vector<8x64xf32>
    %333 = arith.divf %331, %332 : vector<8x64xf32>
    %334 = vector.extract_strided_slice %333 {offsets = [0, 0], sizes = [8, 32], strides = [1, 1]} : vector<8x64xf32> to vector<8x32xf32>
    %335 = vector.extract_strided_slice %333 {offsets = [0, 32], sizes = [8, 32], strides = [1, 1]} : vector<8x64xf32> to vector<8x32xf32>
    %336 = vector.extract_strided_slice %325 {offsets = [0, 64], sizes = [8, 32], strides = [1, 1]} : vector<8x96xf32> to vector<8x32xf32>
    %337 = vector.extract_strided_slice %315 {offsets = [0, 64], sizes = [8, 32], strides = [1, 1]} : vector<8x96xf32> to vector<8x32xf32>
    %338 = arith.mulf %334, %337 : vector<8x32xf32>
    %339 = arith.addf %336, %338 : vector<8x32xf32>
    %340 = math.tanh %339 : vector<8x32xf32>
    %cst_51 = arith.constant 1.000000e+00 : f32
    %341 = vector.broadcast %cst_51 : f32 to vector<8x32xf32>
    %342 = arith.subf %341, %335 : vector<8x32xf32>
    %343 = arith.mulf %342, %340 : vector<8x32xf32>
    %344 = arith.mulf %335, %263 : vector<8x32xf32>
    %345 = arith.addf %343, %344 : vector<8x32xf32>
    %cst_52 = arith.constant dense<0.000000e+00> : vector<8x102xf32>
    %346 = tpu.matmul %314, %1, %cst_52 {dimension_numbers = #tpu.dot_dimension_numbers<[1], [0], [0], [1], [0, 0, 1, 1], [], []>} : vector<8x32xf32>, vector<32x102xf32>, vector<8x102xf32> -> vector<8x102xf32>
    %347 = vector.broadcast %2 : vector<1x102xf32> to vector<8x102xf32>
    %348 = arith.addf %346, %347 : vector<8x102xf32>
    %cst_53 = arith.constant dense<0.000000e+00> : vector<8x102xf32>
    %349 = tpu.matmul %345, %1, %cst_53 {dimension_numbers = #tpu.dot_dimension_numbers<[1], [0], [0], [1], [0, 0, 1, 1], [], []>} : vector<8x32xf32>, vector<32x102xf32>, vector<8x102xf32> -> vector<8x102xf32>
    %350 = vector.broadcast %2 : vector<1x102xf32> to vector<8x102xf32>
    %351 = arith.addf %349, %350 : vector<8x102xf32>
    %352 = vector.extract_strided_slice %348 {offsets = [0, 96], sizes = [8, 6], strides = [1, 1]} : vector<8x102xf32> to vector<8x6xf32>
    %353 = vector.extract_strided_slice %352 {offsets = [0, 0], sizes = [8, 2], strides = [1, 1]} : vector<8x6xf32> to vector<8x2xf32>
    %354 = vector.broadcast %22 : vector<1x6xf32> to vector<8x6xf32>
    %355 = arith.maximumf %354, %352 : vector<8x6xf32>
    %356 = vector.broadcast %27 : vector<1x6xf32> to vector<8x6xf32>
    %357 = arith.minimumf %356, %355 : vector<8x6xf32>
    %c0_54 = arith.constant 0 : index
    %c18 = arith.constant 18 : index
    %358 = vector.load %arg7[%c0_54, %c18] : memref<16x48xf32, #tpu.memory_space<vmem>>, vector<8x6xf32>
    tpu.vector_store %arg7[%c0_54, %c18], %357 {strides = array<i32>} : memref<16x48xf32, #tpu.memory_space<vmem>>, vector<8x6xf32>,
    %359 = vector.extract_strided_slice %351 {offsets = [0, 96], sizes = [8, 6], strides = [1, 1]} : vector<8x102xf32> to vector<8x6xf32>
    %360 = vector.extract_strided_slice %359 {offsets = [0, 0], sizes = [8, 2], strides = [1, 1]} : vector<8x6xf32> to vector<8x2xf32>
    %361 = vector.broadcast %22 : vector<1x6xf32> to vector<8x6xf32>
    %362 = arith.maximumf %361, %359 : vector<8x6xf32>
    %363 = vector.broadcast %27 : vector<1x6xf32> to vector<8x6xf32>
    %364 = arith.minimumf %363, %362 : vector<8x6xf32>
    %c8_55 = arith.constant 8 : index
    %c18_56 = arith.constant 18 : index
    %365 = vector.load %arg7[%c8_55, %c18_56] : memref<16x48xf32, #tpu.memory_space<vmem>>, vector<8x6xf32>
    tpu.vector_store %arg7[%c8_55, %c18_56], %364 {strides = array<i32>} : memref<16x48xf32, #tpu.memory_space<vmem>>, vector<8x6xf32>,
    %366 = vector.extract_strided_slice %348 {offsets = [0, 0], sizes = [8, 96], strides = [1, 1]} : vector<8x102xf32> to vector<8x96xf32>
    %367 = vector.extract_strided_slice %353 {offsets = [0, 0], sizes = [8, 1], strides = [1, 1]} : vector<8x2xf32> to vector<8x1xf32>
    %368 = vector.broadcast %367 : vector<8x1xf32> to vector<8x96xf32>
    %369 = vector.broadcast %3 : vector<1x96xf32> to vector<8x96xf32>
    %370 = arith.mulf %368, %369 : vector<8x96xf32>
    %371 = arith.addf %30, %370 : vector<8x96xf32>
    %372 = vector.extract_strided_slice %353 {offsets = [0, 1], sizes = [8, 1], strides = [1, 1]} : vector<8x2xf32> to vector<8x1xf32>
    %373 = vector.broadcast %372 : vector<8x1xf32> to vector<8x96xf32>
    %374 = vector.broadcast %4 : vector<1x96xf32> to vector<8x96xf32>
    %375 = arith.mulf %373, %374 : vector<8x96xf32>
    %376 = arith.addf %371, %375 : vector<8x96xf32>
    %377 = vector.extract_strided_slice %376 {offsets = [0, 0], sizes = [8, 64], strides = [1, 1]} : vector<8x96xf32> to vector<8x64xf32>
    %378 = vector.extract_strided_slice %366 {offsets = [0, 0], sizes = [8, 64], strides = [1, 1]} : vector<8x96xf32> to vector<8x64xf32>
    %379 = arith.addf %377, %378 : vector<8x64xf32>
    %380 = arith.negf %379 : vector<8x64xf32>
    %381 = math.exp %380 : vector<8x64xf32>
    %cst_57 = arith.constant 1.000000e+00 : f32
    %382 = vector.broadcast %cst_57 : f32 to vector<8x64xf32>
    %383 = arith.addf %382, %381 : vector<8x64xf32>
    %384 = arith.divf %382, %383 : vector<8x64xf32>
    %385 = vector.extract_strided_slice %384 {offsets = [0, 0], sizes = [8, 32], strides = [1, 1]} : vector<8x64xf32> to vector<8x32xf32>
    %386 = vector.extract_strided_slice %384 {offsets = [0, 32], sizes = [8, 32], strides = [1, 1]} : vector<8x64xf32> to vector<8x32xf32>
    %387 = vector.extract_strided_slice %376 {offsets = [0, 64], sizes = [8, 32], strides = [1, 1]} : vector<8x96xf32> to vector<8x32xf32>
    %388 = vector.extract_strided_slice %366 {offsets = [0, 64], sizes = [8, 32], strides = [1, 1]} : vector<8x96xf32> to vector<8x32xf32>
    %389 = arith.mulf %385, %388 : vector<8x32xf32>
    %390 = arith.addf %387, %389 : vector<8x32xf32>
    %391 = math.tanh %390 : vector<8x32xf32>
    %cst_58 = arith.constant 1.000000e+00 : f32
    %392 = vector.broadcast %cst_58 : f32 to vector<8x32xf32>
    %393 = arith.subf %392, %386 : vector<8x32xf32>
    %394 = arith.mulf %393, %391 : vector<8x32xf32>
    %395 = arith.mulf %386, %314 : vector<8x32xf32>
    %396 = arith.addf %394, %395 : vector<8x32xf32>
    %397 = vector.extract_strided_slice %351 {offsets = [0, 0], sizes = [8, 96], strides = [1, 1]} : vector<8x102xf32> to vector<8x96xf32>
    %398 = vector.extract_strided_slice %360 {offsets = [0, 0], sizes = [8, 1], strides = [1, 1]} : vector<8x2xf32> to vector<8x1xf32>
    %399 = vector.broadcast %398 : vector<8x1xf32> to vector<8x96xf32>
    %400 = vector.broadcast %3 : vector<1x96xf32> to vector<8x96xf32>
    %401 = arith.mulf %399, %400 : vector<8x96xf32>
    %402 = arith.addf %35, %401 : vector<8x96xf32>
    %403 = vector.extract_strided_slice %360 {offsets = [0, 1], sizes = [8, 1], strides = [1, 1]} : vector<8x2xf32> to vector<8x1xf32>
    %404 = vector.broadcast %403 : vector<8x1xf32> to vector<8x96xf32>
    %405 = vector.broadcast %4 : vector<1x96xf32> to vector<8x96xf32>
    %406 = arith.mulf %404, %405 : vector<8x96xf32>
    %407 = arith.addf %402, %406 : vector<8x96xf32>
    %408 = vector.extract_strided_slice %407 {offsets = [0, 0], sizes = [8, 64], strides = [1, 1]} : vector<8x96xf32> to vector<8x64xf32>
    %409 = vector.extract_strided_slice %397 {offsets = [0, 0], sizes = [8, 64], strides = [1, 1]} : vector<8x96xf32> to vector<8x64xf32>
    %410 = arith.addf %408, %409 : vector<8x64xf32>
    %411 = arith.negf %410 : vector<8x64xf32>
    %412 = math.exp %411 : vector<8x64xf32>
    %cst_59 = arith.constant 1.000000e+00 : f32
    %413 = vector.broadcast %cst_59 : f32 to vector<8x64xf32>
    %414 = arith.addf %413, %412 : vector<8x64xf32>
    %415 = arith.divf %413, %414 : vector<8x64xf32>
    %416 = vector.extract_strided_slice %415 {offsets = [0, 0], sizes = [8, 32], strides = [1, 1]} : vector<8x64xf32> to vector<8x32xf32>
    %417 = vector.extract_strided_slice %415 {offsets = [0, 32], sizes = [8, 32], strides = [1, 1]} : vector<8x64xf32> to vector<8x32xf32>
    %418 = vector.extract_strided_slice %407 {offsets = [0, 64], sizes = [8, 32], strides = [1, 1]} : vector<8x96xf32> to vector<8x32xf32>
    %419 = vector.extract_strided_slice %397 {offsets = [0, 64], sizes = [8, 32], strides = [1, 1]} : vector<8x96xf32> to vector<8x32xf32>
    %420 = arith.mulf %416, %419 : vector<8x32xf32>
    %421 = arith.addf %418, %420 : vector<8x32xf32>
    %422 = math.tanh %421 : vector<8x32xf32>
    %cst_60 = arith.constant 1.000000e+00 : f32
    %423 = vector.broadcast %cst_60 : f32 to vector<8x32xf32>
    %424 = arith.subf %423, %417 : vector<8x32xf32>
    %425 = arith.mulf %424, %422 : vector<8x32xf32>
    %426 = arith.mulf %417, %345 : vector<8x32xf32>
    %427 = arith.addf %425, %426 : vector<8x32xf32>
    %cst_61 = arith.constant dense<0.000000e+00> : vector<8x102xf32>
    %428 = tpu.matmul %396, %1, %cst_61 {dimension_numbers = #tpu.dot_dimension_numbers<[1], [0], [0], [1], [0, 0, 1, 1], [], []>} : vector<8x32xf32>, vector<32x102xf32>, vector<8x102xf32> -> vector<8x102xf32>
    %429 = vector.broadcast %2 : vector<1x102xf32> to vector<8x102xf32>
    %430 = arith.addf %428, %429 : vector<8x102xf32>
    %cst_62 = arith.constant dense<0.000000e+00> : vector<8x102xf32>
    %431 = tpu.matmul %427, %1, %cst_62 {dimension_numbers = #tpu.dot_dimension_numbers<[1], [0], [0], [1], [0, 0, 1, 1], [], []>} : vector<8x32xf32>, vector<32x102xf32>, vector<8x102xf32> -> vector<8x102xf32>
    %432 = vector.broadcast %2 : vector<1x102xf32> to vector<8x102xf32>
    %433 = arith.addf %431, %432 : vector<8x102xf32>
    %434 = vector.extract_strided_slice %430 {offsets = [0, 96], sizes = [8, 6], strides = [1, 1]} : vector<8x102xf32> to vector<8x6xf32>
    %435 = vector.extract_strided_slice %434 {offsets = [0, 0], sizes = [8, 2], strides = [1, 1]} : vector<8x6xf32> to vector<8x2xf32>
    %436 = vector.broadcast %22 : vector<1x6xf32> to vector<8x6xf32>
    %437 = arith.maximumf %436, %434 : vector<8x6xf32>
    %438 = vector.broadcast %27 : vector<1x6xf32> to vector<8x6xf32>
    %439 = arith.minimumf %438, %437 : vector<8x6xf32>
    %c0_63 = arith.constant 0 : index
    %c24 = arith.constant 24 : index
    %440 = vector.load %arg7[%c0_63, %c24] : memref<16x48xf32, #tpu.memory_space<vmem>>, vector<8x6xf32>
    tpu.vector_store %arg7[%c0_63, %c24], %439 {strides = array<i32>} : memref<16x48xf32, #tpu.memory_space<vmem>>, vector<8x6xf32>,
    %441 = vector.extract_strided_slice %433 {offsets = [0, 96], sizes = [8, 6], strides = [1, 1]} : vector<8x102xf32> to vector<8x6xf32>
    %442 = vector.extract_strided_slice %441 {offsets = [0, 0], sizes = [8, 2], strides = [1, 1]} : vector<8x6xf32> to vector<8x2xf32>
    %443 = vector.broadcast %22 : vector<1x6xf32> to vector<8x6xf32>
    %444 = arith.maximumf %443, %441 : vector<8x6xf32>
    %445 = vector.broadcast %27 : vector<1x6xf32> to vector<8x6xf32>
    %446 = arith.minimumf %445, %444 : vector<8x6xf32>
    %c8_64 = arith.constant 8 : index
    %c24_65 = arith.constant 24 : index
    %447 = vector.load %arg7[%c8_64, %c24_65] : memref<16x48xf32, #tpu.memory_space<vmem>>, vector<8x6xf32>
    tpu.vector_store %arg7[%c8_64, %c24_65], %446 {strides = array<i32>} : memref<16x48xf32, #tpu.memory_space<vmem>>, vector<8x6xf32>,
    %448 = vector.extract_strided_slice %430 {offsets = [0, 0], sizes = [8, 96], strides = [1, 1]} : vector<8x102xf32> to vector<8x96xf32>
    %449 = vector.extract_strided_slice %435 {offsets = [0, 0], sizes = [8, 1], strides = [1, 1]} : vector<8x2xf32> to vector<8x1xf32>
    %450 = vector.broadcast %449 : vector<8x1xf32> to vector<8x96xf32>
    %451 = vector.broadcast %3 : vector<1x96xf32> to vector<8x96xf32>
    %452 = arith.mulf %450, %451 : vector<8x96xf32>
    %453 = arith.addf %30, %452 : vector<8x96xf32>
    %454 = vector.extract_strided_slice %435 {offsets = [0, 1], sizes = [8, 1], strides = [1, 1]} : vector<8x2xf32> to vector<8x1xf32>
    %455 = vector.broadcast %454 : vector<8x1xf32> to vector<8x96xf32>
    %456 = vector.broadcast %4 : vector<1x96xf32> to vector<8x96xf32>
    %457 = arith.mulf %455, %456 : vector<8x96xf32>
    %458 = arith.addf %453, %457 : vector<8x96xf32>
    %459 = vector.extract_strided_slice %458 {offsets = [0, 0], sizes = [8, 64], strides = [1, 1]} : vector<8x96xf32> to vector<8x64xf32>
    %460 = vector.extract_strided_slice %448 {offsets = [0, 0], sizes = [8, 64], strides = [1, 1]} : vector<8x96xf32> to vector<8x64xf32>
    %461 = arith.addf %459, %460 : vector<8x64xf32>
    %462 = arith.negf %461 : vector<8x64xf32>
    %463 = math.exp %462 : vector<8x64xf32>
    %cst_66 = arith.constant 1.000000e+00 : f32
    %464 = vector.broadcast %cst_66 : f32 to vector<8x64xf32>
    %465 = arith.addf %464, %463 : vector<8x64xf32>
    %466 = arith.divf %464, %465 : vector<8x64xf32>
    %467 = vector.extract_strided_slice %466 {offsets = [0, 0], sizes = [8, 32], strides = [1, 1]} : vector<8x64xf32> to vector<8x32xf32>
    %468 = vector.extract_strided_slice %466 {offsets = [0, 32], sizes = [8, 32], strides = [1, 1]} : vector<8x64xf32> to vector<8x32xf32>
    %469 = vector.extract_strided_slice %458 {offsets = [0, 64], sizes = [8, 32], strides = [1, 1]} : vector<8x96xf32> to vector<8x32xf32>
    %470 = vector.extract_strided_slice %448 {offsets = [0, 64], sizes = [8, 32], strides = [1, 1]} : vector<8x96xf32> to vector<8x32xf32>
    %471 = arith.mulf %467, %470 : vector<8x32xf32>
    %472 = arith.addf %469, %471 : vector<8x32xf32>
    %473 = math.tanh %472 : vector<8x32xf32>
    %cst_67 = arith.constant 1.000000e+00 : f32
    %474 = vector.broadcast %cst_67 : f32 to vector<8x32xf32>
    %475 = arith.subf %474, %468 : vector<8x32xf32>
    %476 = arith.mulf %475, %473 : vector<8x32xf32>
    %477 = arith.mulf %468, %396 : vector<8x32xf32>
    %478 = arith.addf %476, %477 : vector<8x32xf32>
    %479 = vector.extract_strided_slice %433 {offsets = [0, 0], sizes = [8, 96], strides = [1, 1]} : vector<8x102xf32> to vector<8x96xf32>
    %480 = vector.extract_strided_slice %442 {offsets = [0, 0], sizes = [8, 1], strides = [1, 1]} : vector<8x2xf32> to vector<8x1xf32>
    %481 = vector.broadcast %480 : vector<8x1xf32> to vector<8x96xf32>
    %482 = vector.broadcast %3 : vector<1x96xf32> to vector<8x96xf32>
    %483 = arith.mulf %481, %482 : vector<8x96xf32>
    %484 = arith.addf %35, %483 : vector<8x96xf32>
    %485 = vector.extract_strided_slice %442 {offsets = [0, 1], sizes = [8, 1], strides = [1, 1]} : vector<8x2xf32> to vector<8x1xf32>
    %486 = vector.broadcast %485 : vector<8x1xf32> to vector<8x96xf32>
    %487 = vector.broadcast %4 : vector<1x96xf32> to vector<8x96xf32>
    %488 = arith.mulf %486, %487 : vector<8x96xf32>
    %489 = arith.addf %484, %488 : vector<8x96xf32>
    %490 = vector.extract_strided_slice %489 {offsets = [0, 0], sizes = [8, 64], strides = [1, 1]} : vector<8x96xf32> to vector<8x64xf32>
    %491 = vector.extract_strided_slice %479 {offsets = [0, 0], sizes = [8, 64], strides = [1, 1]} : vector<8x96xf32> to vector<8x64xf32>
    %492 = arith.addf %490, %491 : vector<8x64xf32>
    %493 = arith.negf %492 : vector<8x64xf32>
    %494 = math.exp %493 : vector<8x64xf32>
    %cst_68 = arith.constant 1.000000e+00 : f32
    %495 = vector.broadcast %cst_68 : f32 to vector<8x64xf32>
    %496 = arith.addf %495, %494 : vector<8x64xf32>
    %497 = arith.divf %495, %496 : vector<8x64xf32>
    %498 = vector.extract_strided_slice %497 {offsets = [0, 0], sizes = [8, 32], strides = [1, 1]} : vector<8x64xf32> to vector<8x32xf32>
    %499 = vector.extract_strided_slice %497 {offsets = [0, 32], sizes = [8, 32], strides = [1, 1]} : vector<8x64xf32> to vector<8x32xf32>
    %500 = vector.extract_strided_slice %489 {offsets = [0, 64], sizes = [8, 32], strides = [1, 1]} : vector<8x96xf32> to vector<8x32xf32>
    %501 = vector.extract_strided_slice %479 {offsets = [0, 64], sizes = [8, 32], strides = [1, 1]} : vector<8x96xf32> to vector<8x32xf32>
    %502 = arith.mulf %498, %501 : vector<8x32xf32>
    %503 = arith.addf %500, %502 : vector<8x32xf32>
    %504 = math.tanh %503 : vector<8x32xf32>
    %cst_69 = arith.constant 1.000000e+00 : f32
    %505 = vector.broadcast %cst_69 : f32 to vector<8x32xf32>
    %506 = arith.subf %505, %499 : vector<8x32xf32>
    %507 = arith.mulf %506, %504 : vector<8x32xf32>
    %508 = arith.mulf %499, %427 : vector<8x32xf32>
    %509 = arith.addf %507, %508 : vector<8x32xf32>
    %cst_70 = arith.constant dense<0.000000e+00> : vector<8x102xf32>
    %510 = tpu.matmul %478, %1, %cst_70 {dimension_numbers = #tpu.dot_dimension_numbers<[1], [0], [0], [1], [0, 0, 1, 1], [], []>} : vector<8x32xf32>, vector<32x102xf32>, vector<8x102xf32> -> vector<8x102xf32>
    %511 = vector.broadcast %2 : vector<1x102xf32> to vector<8x102xf32>
    %512 = arith.addf %510, %511 : vector<8x102xf32>
    %cst_71 = arith.constant dense<0.000000e+00> : vector<8x102xf32>
    %513 = tpu.matmul %509, %1, %cst_71 {dimension_numbers = #tpu.dot_dimension_numbers<[1], [0], [0], [1], [0, 0, 1, 1], [], []>} : vector<8x32xf32>, vector<32x102xf32>, vector<8x102xf32> -> vector<8x102xf32>
    %514 = vector.broadcast %2 : vector<1x102xf32> to vector<8x102xf32>
    %515 = arith.addf %513, %514 : vector<8x102xf32>
    %516 = vector.extract_strided_slice %512 {offsets = [0, 96], sizes = [8, 6], strides = [1, 1]} : vector<8x102xf32> to vector<8x6xf32>
    %517 = vector.extract_strided_slice %516 {offsets = [0, 0], sizes = [8, 2], strides = [1, 1]} : vector<8x6xf32> to vector<8x2xf32>
    %518 = vector.broadcast %22 : vector<1x6xf32> to vector<8x6xf32>
    %519 = arith.maximumf %518, %516 : vector<8x6xf32>
    %520 = vector.broadcast %27 : vector<1x6xf32> to vector<8x6xf32>
    %521 = arith.minimumf %520, %519 : vector<8x6xf32>
    %c0_72 = arith.constant 0 : index
    %c30 = arith.constant 30 : index
    %522 = vector.load %arg7[%c0_72, %c30] : memref<16x48xf32, #tpu.memory_space<vmem>>, vector<8x6xf32>
    tpu.vector_store %arg7[%c0_72, %c30], %521 {strides = array<i32>} : memref<16x48xf32, #tpu.memory_space<vmem>>, vector<8x6xf32>,
    %523 = vector.extract_strided_slice %515 {offsets = [0, 96], sizes = [8, 6], strides = [1, 1]} : vector<8x102xf32> to vector<8x6xf32>
    %524 = vector.extract_strided_slice %523 {offsets = [0, 0], sizes = [8, 2], strides = [1, 1]} : vector<8x6xf32> to vector<8x2xf32>
    %525 = vector.broadcast %22 : vector<1x6xf32> to vector<8x6xf32>
    %526 = arith.maximumf %525, %523 : vector<8x6xf32>
    %527 = vector.broadcast %27 : vector<1x6xf32> to vector<8x6xf32>
    %528 = arith.minimumf %527, %526 : vector<8x6xf32>
    %c8_73 = arith.constant 8 : index
    %c30_74 = arith.constant 30 : index
    %529 = vector.load %arg7[%c8_73, %c30_74] : memref<16x48xf32, #tpu.memory_space<vmem>>, vector<8x6xf32>
    tpu.vector_store %arg7[%c8_73, %c30_74], %528 {strides = array<i32>} : memref<16x48xf32, #tpu.memory_space<vmem>>, vector<8x6xf32>,
    %530 = vector.extract_strided_slice %512 {offsets = [0, 0], sizes = [8, 96], strides = [1, 1]} : vector<8x102xf32> to vector<8x96xf32>
    %531 = vector.extract_strided_slice %517 {offsets = [0, 0], sizes = [8, 1], strides = [1, 1]} : vector<8x2xf32> to vector<8x1xf32>
    %532 = vector.broadcast %531 : vector<8x1xf32> to vector<8x96xf32>
    %533 = vector.broadcast %3 : vector<1x96xf32> to vector<8x96xf32>
    %534 = arith.mulf %532, %533 : vector<8x96xf32>
    %535 = arith.addf %30, %534 : vector<8x96xf32>
    %536 = vector.extract_strided_slice %517 {offsets = [0, 1], sizes = [8, 1], strides = [1, 1]} : vector<8x2xf32> to vector<8x1xf32>
    %537 = vector.broadcast %536 : vector<8x1xf32> to vector<8x96xf32>
    %538 = vector.broadcast %4 : vector<1x96xf32> to vector<8x96xf32>
    %539 = arith.mulf %537, %538 : vector<8x96xf32>
    %540 = arith.addf %535, %539 : vector<8x96xf32>
    %541 = vector.extract_strided_slice %540 {offsets = [0, 0], sizes = [8, 64], strides = [1, 1]} : vector<8x96xf32> to vector<8x64xf32>
    %542 = vector.extract_strided_slice %530 {offsets = [0, 0], sizes = [8, 64], strides = [1, 1]} : vector<8x96xf32> to vector<8x64xf32>
    %543 = arith.addf %541, %542 : vector<8x64xf32>
    %544 = arith.negf %543 : vector<8x64xf32>
    %545 = math.exp %544 : vector<8x64xf32>
    %cst_75 = arith.constant 1.000000e+00 : f32
    %546 = vector.broadcast %cst_75 : f32 to vector<8x64xf32>
    %547 = arith.addf %546, %545 : vector<8x64xf32>
    %548 = arith.divf %546, %547 : vector<8x64xf32>
    %549 = vector.extract_strided_slice %548 {offsets = [0, 0], sizes = [8, 32], strides = [1, 1]} : vector<8x64xf32> to vector<8x32xf32>
    %550 = vector.extract_strided_slice %548 {offsets = [0, 32], sizes = [8, 32], strides = [1, 1]} : vector<8x64xf32> to vector<8x32xf32>
    %551 = vector.extract_strided_slice %540 {offsets = [0, 64], sizes = [8, 32], strides = [1, 1]} : vector<8x96xf32> to vector<8x32xf32>
    %552 = vector.extract_strided_slice %530 {offsets = [0, 64], sizes = [8, 32], strides = [1, 1]} : vector<8x96xf32> to vector<8x32xf32>
    %553 = arith.mulf %549, %552 : vector<8x32xf32>
    %554 = arith.addf %551, %553 : vector<8x32xf32>
    %555 = math.tanh %554 : vector<8x32xf32>
    %cst_76 = arith.constant 1.000000e+00 : f32
    %556 = vector.broadcast %cst_76 : f32 to vector<8x32xf32>
    %557 = arith.subf %556, %550 : vector<8x32xf32>
    %558 = arith.mulf %557, %555 : vector<8x32xf32>
    %559 = arith.mulf %550, %478 : vector<8x32xf32>
    %560 = arith.addf %558, %559 : vector<8x32xf32>
    %561 = vector.extract_strided_slice %515 {offsets = [0, 0], sizes = [8, 96], strides = [1, 1]} : vector<8x102xf32> to vector<8x96xf32>
    %562 = vector.extract_strided_slice %524 {offsets = [0, 0], sizes = [8, 1], strides = [1, 1]} : vector<8x2xf32> to vector<8x1xf32>
    %563 = vector.broadcast %562 : vector<8x1xf32> to vector<8x96xf32>
    %564 = vector.broadcast %3 : vector<1x96xf32> to vector<8x96xf32>
    %565 = arith.mulf %563, %564 : vector<8x96xf32>
    %566 = arith.addf %35, %565 : vector<8x96xf32>
    %567 = vector.extract_strided_slice %524 {offsets = [0, 1], sizes = [8, 1], strides = [1, 1]} : vector<8x2xf32> to vector<8x1xf32>
    %568 = vector.broadcast %567 : vector<8x1xf32> to vector<8x96xf32>
    %569 = vector.broadcast %4 : vector<1x96xf32> to vector<8x96xf32>
    %570 = arith.mulf %568, %569 : vector<8x96xf32>
    %571 = arith.addf %566, %570 : vector<8x96xf32>
    %572 = vector.extract_strided_slice %571 {offsets = [0, 0], sizes = [8, 64], strides = [1, 1]} : vector<8x96xf32> to vector<8x64xf32>
    %573 = vector.extract_strided_slice %561 {offsets = [0, 0], sizes = [8, 64], strides = [1, 1]} : vector<8x96xf32> to vector<8x64xf32>
    %574 = arith.addf %572, %573 : vector<8x64xf32>
    %575 = arith.negf %574 : vector<8x64xf32>
    %576 = math.exp %575 : vector<8x64xf32>
    %cst_77 = arith.constant 1.000000e+00 : f32
    %577 = vector.broadcast %cst_77 : f32 to vector<8x64xf32>
    %578 = arith.addf %577, %576 : vector<8x64xf32>
    %579 = arith.divf %577, %578 : vector<8x64xf32>
    %580 = vector.extract_strided_slice %579 {offsets = [0, 0], sizes = [8, 32], strides = [1, 1]} : vector<8x64xf32> to vector<8x32xf32>
    %581 = vector.extract_strided_slice %579 {offsets = [0, 32], sizes = [8, 32], strides = [1, 1]} : vector<8x64xf32> to vector<8x32xf32>
    %582 = vector.extract_strided_slice %571 {offsets = [0, 64], sizes = [8, 32], strides = [1, 1]} : vector<8x96xf32> to vector<8x32xf32>
    %583 = vector.extract_strided_slice %561 {offsets = [0, 64], sizes = [8, 32], strides = [1, 1]} : vector<8x96xf32> to vector<8x32xf32>
    %584 = arith.mulf %580, %583 : vector<8x32xf32>
    %585 = arith.addf %582, %584 : vector<8x32xf32>
    %586 = math.tanh %585 : vector<8x32xf32>
    %cst_78 = arith.constant 1.000000e+00 : f32
    %587 = vector.broadcast %cst_78 : f32 to vector<8x32xf32>
    %588 = arith.subf %587, %581 : vector<8x32xf32>
    %589 = arith.mulf %588, %586 : vector<8x32xf32>
    %590 = arith.mulf %581, %509 : vector<8x32xf32>
    %591 = arith.addf %589, %590 : vector<8x32xf32>
    %cst_79 = arith.constant dense<0.000000e+00> : vector<8x102xf32>
    %592 = tpu.matmul %560, %1, %cst_79 {dimension_numbers = #tpu.dot_dimension_numbers<[1], [0], [0], [1], [0, 0, 1, 1], [], []>} : vector<8x32xf32>, vector<32x102xf32>, vector<8x102xf32> -> vector<8x102xf32>
    %593 = vector.broadcast %2 : vector<1x102xf32> to vector<8x102xf32>
    %594 = arith.addf %592, %593 : vector<8x102xf32>
    %cst_80 = arith.constant dense<0.000000e+00> : vector<8x102xf32>
    %595 = tpu.matmul %591, %1, %cst_80 {dimension_numbers = #tpu.dot_dimension_numbers<[1], [0], [0], [1], [0, 0, 1, 1], [], []>} : vector<8x32xf32>, vector<32x102xf32>, vector<8x102xf32> -> vector<8x102xf32>
    %596 = vector.broadcast %2 : vector<1x102xf32> to vector<8x102xf32>
    %597 = arith.addf %595, %596 : vector<8x102xf32>
    %598 = vector.extract_strided_slice %594 {offsets = [0, 96], sizes = [8, 6], strides = [1, 1]} : vector<8x102xf32> to vector<8x6xf32>
    %599 = vector.extract_strided_slice %598 {offsets = [0, 0], sizes = [8, 2], strides = [1, 1]} : vector<8x6xf32> to vector<8x2xf32>
    %600 = vector.broadcast %22 : vector<1x6xf32> to vector<8x6xf32>
    %601 = arith.maximumf %600, %598 : vector<8x6xf32>
    %602 = vector.broadcast %27 : vector<1x6xf32> to vector<8x6xf32>
    %603 = arith.minimumf %602, %601 : vector<8x6xf32>
    %c0_81 = arith.constant 0 : index
    %c36 = arith.constant 36 : index
    %604 = vector.load %arg7[%c0_81, %c36] : memref<16x48xf32, #tpu.memory_space<vmem>>, vector<8x6xf32>
    tpu.vector_store %arg7[%c0_81, %c36], %603 {strides = array<i32>} : memref<16x48xf32, #tpu.memory_space<vmem>>, vector<8x6xf32>,
    %605 = vector.extract_strided_slice %597 {offsets = [0, 96], sizes = [8, 6], strides = [1, 1]} : vector<8x102xf32> to vector<8x6xf32>
    %606 = vector.extract_strided_slice %605 {offsets = [0, 0], sizes = [8, 2], strides = [1, 1]} : vector<8x6xf32> to vector<8x2xf32>
    %607 = vector.broadcast %22 : vector<1x6xf32> to vector<8x6xf32>
    %608 = arith.maximumf %607, %605 : vector<8x6xf32>
    %609 = vector.broadcast %27 : vector<1x6xf32> to vector<8x6xf32>
    %610 = arith.minimumf %609, %608 : vector<8x6xf32>
    %c8_82 = arith.constant 8 : index
    %c36_83 = arith.constant 36 : index
    %611 = vector.load %arg7[%c8_82, %c36_83] : memref<16x48xf32, #tpu.memory_space<vmem>>, vector<8x6xf32>
    tpu.vector_store %arg7[%c8_82, %c36_83], %610 {strides = array<i32>} : memref<16x48xf32, #tpu.memory_space<vmem>>, vector<8x6xf32>,
    %612 = vector.extract_strided_slice %594 {offsets = [0, 0], sizes = [8, 96], strides = [1, 1]} : vector<8x102xf32> to vector<8x96xf32>
    %613 = vector.extract_strided_slice %599 {offsets = [0, 0], sizes = [8, 1], strides = [1, 1]} : vector<8x2xf32> to vector<8x1xf32>
    %614 = vector.broadcast %613 : vector<8x1xf32> to vector<8x96xf32>
    %615 = vector.broadcast %3 : vector<1x96xf32> to vector<8x96xf32>
    %616 = arith.mulf %614, %615 : vector<8x96xf32>
    %617 = arith.addf %30, %616 : vector<8x96xf32>
    %618 = vector.extract_strided_slice %599 {offsets = [0, 1], sizes = [8, 1], strides = [1, 1]} : vector<8x2xf32> to vector<8x1xf32>
    %619 = vector.broadcast %618 : vector<8x1xf32> to vector<8x96xf32>
    %620 = vector.broadcast %4 : vector<1x96xf32> to vector<8x96xf32>
    %621 = arith.mulf %619, %620 : vector<8x96xf32>
    %622 = arith.addf %617, %621 : vector<8x96xf32>
    %623 = vector.extract_strided_slice %622 {offsets = [0, 0], sizes = [8, 64], strides = [1, 1]} : vector<8x96xf32> to vector<8x64xf32>
    %624 = vector.extract_strided_slice %612 {offsets = [0, 0], sizes = [8, 64], strides = [1, 1]} : vector<8x96xf32> to vector<8x64xf32>
    %625 = arith.addf %623, %624 : vector<8x64xf32>
    %626 = arith.negf %625 : vector<8x64xf32>
    %627 = math.exp %626 : vector<8x64xf32>
    %cst_84 = arith.constant 1.000000e+00 : f32
    %628 = vector.broadcast %cst_84 : f32 to vector<8x64xf32>
    %629 = arith.addf %628, %627 : vector<8x64xf32>
    %630 = arith.divf %628, %629 : vector<8x64xf32>
    %631 = vector.extract_strided_slice %630 {offsets = [0, 0], sizes = [8, 32], strides = [1, 1]} : vector<8x64xf32> to vector<8x32xf32>
    %632 = vector.extract_strided_slice %630 {offsets = [0, 32], sizes = [8, 32], strides = [1, 1]} : vector<8x64xf32> to vector<8x32xf32>
    %633 = vector.extract_strided_slice %622 {offsets = [0, 64], sizes = [8, 32], strides = [1, 1]} : vector<8x96xf32> to vector<8x32xf32>
    %634 = vector.extract_strided_slice %612 {offsets = [0, 64], sizes = [8, 32], strides = [1, 1]} : vector<8x96xf32> to vector<8x32xf32>
    %635 = arith.mulf %631, %634 : vector<8x32xf32>
    %636 = arith.addf %633, %635 : vector<8x32xf32>
    %637 = math.tanh %636 : vector<8x32xf32>
    %cst_85 = arith.constant 1.000000e+00 : f32
    %638 = vector.broadcast %cst_85 : f32 to vector<8x32xf32>
    %639 = arith.subf %638, %632 : vector<8x32xf32>
    %640 = arith.mulf %639, %637 : vector<8x32xf32>
    %641 = arith.mulf %632, %560 : vector<8x32xf32>
    %642 = arith.addf %640, %641 : vector<8x32xf32>
    %643 = vector.extract_strided_slice %597 {offsets = [0, 0], sizes = [8, 96], strides = [1, 1]} : vector<8x102xf32> to vector<8x96xf32>
    %644 = vector.extract_strided_slice %606 {offsets = [0, 0], sizes = [8, 1], strides = [1, 1]} : vector<8x2xf32> to vector<8x1xf32>
    %645 = vector.broadcast %644 : vector<8x1xf32> to vector<8x96xf32>
    %646 = vector.broadcast %3 : vector<1x96xf32> to vector<8x96xf32>
    %647 = arith.mulf %645, %646 : vector<8x96xf32>
    %648 = arith.addf %35, %647 : vector<8x96xf32>
    %649 = vector.extract_strided_slice %606 {offsets = [0, 1], sizes = [8, 1], strides = [1, 1]} : vector<8x2xf32> to vector<8x1xf32>
    %650 = vector.broadcast %649 : vector<8x1xf32> to vector<8x96xf32>
    %651 = vector.broadcast %4 : vector<1x96xf32> to vector<8x96xf32>
    %652 = arith.mulf %650, %651 : vector<8x96xf32>
    %653 = arith.addf %648, %652 : vector<8x96xf32>
    %654 = vector.extract_strided_slice %653 {offsets = [0, 0], sizes = [8, 64], strides = [1, 1]} : vector<8x96xf32> to vector<8x64xf32>
    %655 = vector.extract_strided_slice %643 {offsets = [0, 0], sizes = [8, 64], strides = [1, 1]} : vector<8x96xf32> to vector<8x64xf32>
    %656 = arith.addf %654, %655 : vector<8x64xf32>
    %657 = arith.negf %656 : vector<8x64xf32>
    %658 = math.exp %657 : vector<8x64xf32>
    %cst_86 = arith.constant 1.000000e+00 : f32
    %659 = vector.broadcast %cst_86 : f32 to vector<8x64xf32>
    %660 = arith.addf %659, %658 : vector<8x64xf32>
    %661 = arith.divf %659, %660 : vector<8x64xf32>
    %662 = vector.extract_strided_slice %661 {offsets = [0, 0], sizes = [8, 32], strides = [1, 1]} : vector<8x64xf32> to vector<8x32xf32>
    %663 = vector.extract_strided_slice %661 {offsets = [0, 32], sizes = [8, 32], strides = [1, 1]} : vector<8x64xf32> to vector<8x32xf32>
    %664 = vector.extract_strided_slice %653 {offsets = [0, 64], sizes = [8, 32], strides = [1, 1]} : vector<8x96xf32> to vector<8x32xf32>
    %665 = vector.extract_strided_slice %643 {offsets = [0, 64], sizes = [8, 32], strides = [1, 1]} : vector<8x96xf32> to vector<8x32xf32>
    %666 = arith.mulf %662, %665 : vector<8x32xf32>
    %667 = arith.addf %664, %666 : vector<8x32xf32>
    %668 = math.tanh %667 : vector<8x32xf32>
    %cst_87 = arith.constant 1.000000e+00 : f32
    %669 = vector.broadcast %cst_87 : f32 to vector<8x32xf32>
    %670 = arith.subf %669, %663 : vector<8x32xf32>
    %671 = arith.mulf %670, %668 : vector<8x32xf32>
    %672 = arith.mulf %663, %591 : vector<8x32xf32>
    %673 = arith.addf %671, %672 : vector<8x32xf32>
    %cst_88 = arith.constant dense<0.000000e+00> : vector<8x102xf32>
    %674 = tpu.matmul %642, %1, %cst_88 {dimension_numbers = #tpu.dot_dimension_numbers<[1], [0], [0], [1], [0, 0, 1, 1], [], []>} : vector<8x32xf32>, vector<32x102xf32>, vector<8x102xf32> -> vector<8x102xf32>
    %675 = vector.broadcast %2 : vector<1x102xf32> to vector<8x102xf32>
    %676 = arith.addf %674, %675 : vector<8x102xf32>
    %cst_89 = arith.constant dense<0.000000e+00> : vector<8x102xf32>
    %677 = tpu.matmul %673, %1, %cst_89 {dimension_numbers = #tpu.dot_dimension_numbers<[1], [0], [0], [1], [0, 0, 1, 1], [], []>} : vector<8x32xf32>, vector<32x102xf32>, vector<8x102xf32> -> vector<8x102xf32>
    %678 = vector.broadcast %2 : vector<1x102xf32> to vector<8x102xf32>
    %679 = arith.addf %677, %678 : vector<8x102xf32>
    %680 = vector.extract_strided_slice %676 {offsets = [0, 96], sizes = [8, 6], strides = [1, 1]} : vector<8x102xf32> to vector<8x6xf32>
    %681 = vector.broadcast %22 : vector<1x6xf32> to vector<8x6xf32>
    %682 = arith.maximumf %681, %680 : vector<8x6xf32>
    %683 = vector.broadcast %27 : vector<1x6xf32> to vector<8x6xf32>
    %684 = arith.minimumf %683, %682 : vector<8x6xf32>
    %c0_90 = arith.constant 0 : index
    %c42 = arith.constant 42 : index
    %685 = vector.load %arg7[%c0_90, %c42] : memref<16x48xf32, #tpu.memory_space<vmem>>, vector<8x6xf32>
    tpu.vector_store %arg7[%c0_90, %c42], %684 {strides = array<i32>} : memref<16x48xf32, #tpu.memory_space<vmem>>, vector<8x6xf32>,
    %686 = vector.extract_strided_slice %679 {offsets = [0, 96], sizes = [8, 6], strides = [1, 1]} : vector<8x102xf32> to vector<8x6xf32>
    %687 = vector.broadcast %22 : vector<1x6xf32> to vector<8x6xf32>
    %688 = arith.maximumf %687, %686 : vector<8x6xf32>
    %689 = vector.broadcast %27 : vector<1x6xf32> to vector<8x6xf32>
    %690 = arith.minimumf %689, %688 : vector<8x6xf32>
    %c8_91 = arith.constant 8 : index
    %c42_92 = arith.constant 42 : index
    %691 = vector.load %arg7[%c8_91, %c42_92] : memref<16x48xf32, #tpu.memory_space<vmem>>, vector<8x6xf32>
    tpu.vector_store %arg7[%c8_91, %c42_92], %690 {strides = array<i32>} : memref<16x48xf32, #tpu.memory_space<vmem>>, vector<8x6xf32>,
    return
  }
  func.func @transform_0(%arg0: i32) -> (i32, i32) {
    %c0_i32 = arith.constant 0 : i32
    %c0_i32_0 = arith.constant 0 : i32
    return %arg0, %c0_i32 : i32, i32
  }
  func.func @transform_1(%arg0: i32) -> (i32, i32) {
    %c0_i32 = arith.constant 0 : i32
    %c0_i32_0 = arith.constant 0 : i32
    %c0_i32_1 = arith.constant 0 : i32
    return %c0_i32, %c0_i32_0 : i32, i32
  }
  func.func @transform_2(%arg0: i32) -> (i32, i32) {
    %c0_i32 = arith.constant 0 : i32
    %c0_i32_0 = arith.constant 0 : i32
    %c0_i32_1 = arith.constant 0 : i32
    return %c0_i32, %c0_i32_0 : i32, i32
  }
  func.func @transform_3(%arg0: i32) -> (i32, i32) {
    %c0_i32 = arith.constant 0 : i32
    %c0_i32_0 = arith.constant 0 : i32
    %c0_i32_1 = arith.constant 0 : i32
    return %c0_i32, %c0_i32_0 : i32, i32
  }
  func.func @transform_4(%arg0: i32) -> (i32, i32) {
    %c0_i32 = arith.constant 0 : i32
    %c0_i32_0 = arith.constant 0 : i32
    %c0_i32_1 = arith.constant 0 : i32
    return %c0_i32, %c0_i32_0 : i32, i32
  }
  func.func @transform_5(%arg0: i32) -> (i32, i32) {
    %c0_i32 = arith.constant 0 : i32
    %c0_i32_0 = arith.constant 0 : i32
    %c0_i32_1 = arith.constant 0 : i32
    return %c0_i32, %c0_i32_0 : i32, i32
  }
  func.func @transform_6(%arg0: i32) -> (i32, i32) {
    %c0_i32 = arith.constant 0 : i32
    %c0_i32_0 = arith.constant 0 : i32
    return %arg0, %c0_i32 : i32, i32
  }
}

</mosaic_0001>

<bundles_post_ra>
// kernel: tpu_custom_call.1
= control target key start
LH: loop header
LB: loop body
LE: loop exit
PB: predicated region body
PF: predicated region fallthrough
CT: control target
= control target key end

     0   :  { %11 = vsyncpa [#allocation3], 0  ;;  %s3571_s0 = inlined_call_operand.hbm [shape: f32[16,32], index: 0, kind: input, shape index: {}]   ;;  %s3572_s1 = inlined_call_operand.hbm [shape: f32[32,230], index: 1, kind: input, shape index: {}]   ;;  %s3573_s2 = inlined_call_operand.vmem [shape: f32[1,230], index: 2, kind: input, shape index: {}]   ;;  %s3574_s3 = inlined_call_operand.vmem [shape: f32[2,96], index: 3, kind: input, shape index: {}]   ;;  %s3575_s4 = inlined_call_operand.hbm [shape: f32[32,102], index: 4, kind: input, shape index: {}]   ;;  %s3576_s5 = inlined_call_operand.vmem [shape: f32[1,102], index: 5, kind: input, shape index: {}]   ;;  %s3577_s6 = inlined_call_operand.hbm [shape: f32[16,48], index: 6, kind: output, shape index: {}]  }
   0x1   :  { %12 = vsyncpa [#allocation6], 0 }
   0x2   :  { %13 = vsyncpa [#allocation4], 0  ;;  %s2949_s21 = smov [#allocation5]   ;;  %s2855_s25 = scalar_lea.hbm %s3572_s1, 1024 }
   0x3   :  { %s31_s22 = sshll.u32 %s2949_s21, 4  ;;  %p2856_p0 = scmp.ne.s32.totalorder %s3572_s1, %s2855_s25  ;;  %s32_s22 = int_to_ptr.vmem [resolvable:$true] %s31_s22 }
   0x4   :  { %p2859_p1 = scmp.lt.u32.totalorder %s2855_s25, %s3572_s1 }
   0x6   :  { %p2861_p2 = pnand %p2859_p1, %p2856_p0 }
   0x8   :  { %2864 = shalt.err (!%p2861_p2)
}
   0x9   :  { %s2865_s30 = scalar_lea.vmem %s32_s22, 1024  ;;  %p2870_p4 = scmp.lt.s32.totalorder %s32_s22, %s32_s22 }
   0xa   :  { %p2866_p3 = scmp.ne.s32.totalorder %s32_s22, %s2865_s30  ;;  %p2871_p5 = scmp.lt.s32.totalorder %s2865_s30, %s2865_s30 }
   0xc   :  { %p2872_p6 = por %p2871_p5, %p2870_p4 }
   0xe   :  { %p2873_p7 = pnand %p2872_p6, %p2866_p3 }
  0x10   :  { %2876 = shalt.err (!%p2873_p7)
}
  0x11   :  { %s2950_s7 = smov 256   ;;  %s2951_s8 = smov 16  }
  0x12   :  { %37 = dma.hbm_to_vmem [thread:$0]  %s3572_s1, 1024, %s32_s22, [#allocation6], %s2950_s7, %s2950_s7, %s2951_s8  }
  0x13   :  { %s2952_s11 = smov [#allocation2]   ;;  %s2877_s15 = scalar_lea.hbm %s3571_s0, 256 }
  0x14   :  { %s19_s12 = sshll.u32 %s2952_s11, 4  ;;  %p2878_p8 = scmp.ne.s32.totalorder %s3571_s0, %s2877_s15  ;;  %s20_s12 = int_to_ptr.vmem [resolvable:$true] %s19_s12 }
  0x15   :  { %p2881_p9 = scmp.lt.u32.totalorder %s2877_s15, %s3571_s0 }
  0x17   :  { %p2883_p10 = pnand %p2881_p9, %p2878_p8 }
  0x19   :  { %2886 = shalt.err (!%p2883_p10)
}
  0x1a   :  { %s2887_s20 = scalar_lea.vmem %s20_s12, 256  ;;  %p2892_p12 = scmp.lt.s32.totalorder %s20_s12, %s20_s12 }
  0x1b   :  { %p2888_p11 = scmp.ne.s32.totalorder %s20_s12, %s2887_s20  ;;  %p2893_p13 = scmp.lt.s32.totalorder %s2887_s20, %s2887_s20 }
  0x1d   :  { %p2894_p0 = por %p2893_p13, %p2892_p12 }
  0x1f   :  { %p2895_p1 = pnand %p2894_p0, %p2888_p11 }
  0x21   :  { %2898 = shalt.err (!%p2895_p1)
}
  0x22   :  { %s2953_s1 = smov 128   ;;  %s2954_s21 = smov 8  }
  0x23   :  { %25 = dma.hbm_to_vmem [thread:$0]  %s3571_s0, 256, %s20_s12, [#allocation3], %s2953_s1, %s2953_s1, %s2954_s21  }
  0x24   :  { %s2955_s24 = smov [#allocation7]   ;;  %s2899_s28 = scalar_lea.hbm %s3575_s4, 512 }
  0x25   :  { %s47_s25 = sshll.u32 %s2955_s24, 4  ;;  %p2900_p2 = scmp.ne.s32.totalorder %s3575_s4, %s2899_s28  ;;  %s48_s25 = int_to_ptr.vmem [resolvable:$true] %s47_s25 }
  0x26   :  { %p2903_p3 = scmp.lt.u32.totalorder %s2899_s28, %s3575_s4 }
  0x28   :  { %p2905_p4 = pnand %p2903_p3, %p2900_p2 }
  0x2a   :  { %2908 = shalt.err (!%p2905_p4)
}
  0x2b   :  { %s2909_s9 = scalar_lea.vmem %s48_s25, 512  ;;  %p2914_p6 = scmp.lt.s32.totalorder %s48_s25, %s48_s25 }
  0x2c   :  { %p2910_p5 = scmp.ne.s32.totalorder %s48_s25, %s2909_s9  ;;  %p2915_p7 = scmp.lt.s32.totalorder %s2909_s9, %s2909_s9 }
  0x2e   :  { %p2916_p8 = por %p2915_p7, %p2914_p6 }
  0x30   :  { %p2917_p9 = pnand %p2916_p8, %p2910_p5 }
  0x32   :  { %2920 = shalt.err (!%p2917_p9)
}
  0x33   :  { %53 = dma.hbm_to_vmem [thread:$0]  %s3575_s4, 512, %s48_s25, [#allocation6], %s2953_s1, %s2953_s1, %s2954_s21  }
  0x34   :  { %2943 = dma.done.wait [#allocation3], 256  }
  0x35   :  { %2944 = vsyncadd [#allocation3], 4294967040 }
  0x36   :  { %2945 = dma.done.wait [#allocation6], 1536  }
  0x37   :  { %2946 = vsyncadd [#allocation6], 4294965760  ;;  %v2956_v0 = vmov 0.0   ;;  %v75_v1 = vld [vmem:[#allocation5 + $0x8] sm:$0xff]  ;;  %v77_v2 = vld [vmem:[#allocation5 + $0x18] sm:$0xff]  ;;  %s2957_s14 = smov 32   ;;  %v84_v19 = vlaneseq }
  0x38   :  { %165 = vmatprep.mubr.f32.mxu0 %v2956_v0  ;;  %v74_v3 = vld [vmem:[#allocation5] sm:$0xff]  ;;  %v2599_v4 = vpack.c.bf16 %v77_v2, %v75_v1  ;;  %v76_v5 = vld [vmem:[#allocation5 + $0x10] sm:$0xff]  ;;  %v79_v6 = vld [vmem:[#allocation5 + $0x28] sm:$0xff]  ;;  %vm94_vm0 = vcmask 261120   ;;  %s2958_s17 = smov 96   ;;  %v2960_v63 = vmov 0.0|0.0  }
  0x39   :  { %v81_v7 = vld [vmem:[#allocation5 + $0x38] sm:$0xff]  ;;  %v2601_v8 = vpack.c.bf16 %v76_v5, %v74_v3  ;;  %v78_v10 = vld [vmem:[#allocation5 + $0x20] sm:$0xff]  ;;  %v80_v11 = vld [vmem:[#allocation5 + $0x30] sm:$0xff]  ;;  %v85_v20 = vshrl.u32 %v84_v19, 7  ;;  %2607 = vmatprep.subr.bf16.mxu1 %v2960_v63  ;;  %vm2961_vm1 = vmmov 0   ;;  %vm438_vm6 = vcmask 48128  }
  0x3a   :  { %v2603_v9 = vpack.c.bf16 %v81_v7, %v79_v6  ;;  %2600 = vmatprep.subr.bf16.mxu0 %v2599_v4  ;;  %v3055_v12 = vld [vmem:[%s3574_s3] ss:$0 sm:$0xff]  ;;  %v3060_v13 = vld [vmem:[%s3574_s3 + $0x1] ss:$0 sm:$0xff]  ;;  %v2605_v14 = vpack.c.bf16 %v80_v11, %v78_v10  ;;  %v66_v18 = vld [vmem:[#allocation2 + $0x8] sm:$0xff]  ;;  %2431 = vmatprep.mubr.msk.f32.mxu1 %vm2961_vm1, %v2956_v0  ;;  %s2967_s26 = smov 12  }
  0x3b   :  { %2602 = vmatpush1.bf16.msra.mxu0 %v2601_v8  ;;  %v192_v15 = vmul.f32 0.0, %v3055_v12  ;;  %v202_v16 = vmul.f32 0.0, %v3060_v13  ;;  %v65_v17 = vld [vmem:[#allocation2] sm:$0xff]  ;;  %v90_v21 = vsub.s32 1, %v85_v20  ;;  %v86_v30 = vsub.s32 0, %v85_v20  ;;  %v67_v60 = vld [vmem:[#allocation7] sm:$0xff] }
  0x3c   :  { %2604 = vmatprep.subr.bf16.mxu0 %v2603_v9  ;;  %v82_v22 = vld [vmem:[%s3573_s2] sm:$0x3]  ;;  %s2959_s2 = smov 64   ;;  %v68_v61 = vld [vmem:[#allocation7 + $0x8] sm:$0xff]  ;;  %v70_v2 = vld [vmem:[#allocation7 + $0x18] sm:$0xff]  ;;  %s2968_s27 = smov 18  }
  0x3d   :  { %194 = vrot.lane.b32.xlu0 %v192_v15, %s2957_s14  ;;  %v91_v23 = vrot.slane %v82_v22, %v90_v21  ;;  %v87_v31 = vrot.slane %v82_v22, %v86_v30  ;;  %v69_v62 = vld [vmem:[#allocation7 + $0x10] sm:$0xff]  ;;  %v3090_v1 = vpack.c.bf16 %v68_v61, %v67_v60  ;;  %s2969_s28 = smov 24   ;;  %s2970_s29 = smov 30   ;;  %vm697_vm7 = vcmask 97328  }
  0x3e   :  { %v3099_v3 = vpack.c.bf16 %v70_v2, %v69_v62  ;;  %s2971_s30 = smov 36   ;;  %s2972_s7 = smov 42   ;;  %vm960_vm8 = vcmask 146528   ;;  %vm1223_vm9 = vcmask 195728   ;;  %vm1486_vm10 = vcmask 244928  }
  0x3f   :  { %2606 = vmatpush1.bf16.msra.mxu0 %v2605_v14  ;;  %2609 = vmatpush3.bf16.msra.mxu1 %v3090_v1  ;;  %vm1749_vm11 = vcmask 294128   ;;  %vm2012_vm12 = vcmask 343328   ;;  %s2973_s8 = smov [#allocation8]   ;;  %vm2275_vm13 = vcmask 392528  }
  0x40   :  { %2613 = vmatprep.subr.bf16.mxu0 %v2960_v63  ;;  %2610 = vmatprep.subr.bf16.mxu1 %v2960_v63  ;;  %s2293_s9 = sshll.u32 %s2973_s8, 4  ;;  %s2294_s9 = int_to_ptr.vmem [resolvable:$true] %s2293_s9 }
  0x41   :  { %204 = vrot.lane.b32.xlu0 %v202_v16, %s2957_s14  ;;  %s2921_s0 = scalar_lea.vmem %s2294_s9, 256  ;;  %p2926_p11 = scmp.lt.s32.totalorder %s2294_s9, %s2294_s9 }
  0x42   :  { %2306 = vmatmul.mubr.msk.f32.vlgmr.msra.gmra.mrb[0].mxu0 %vm94_vm0, %v65_v17  ;;  %p2922_p10 = scmp.ne.s32.totalorder %s2294_s9, %s2921_s0  ;;  %p2927_p12 = scmp.lt.s32.totalorder %s2921_s0, %s2921_s0 }
  0x43   :  { %171 = vmatprep.mubr.f32.mxu0 %v2956_v0  ;;  %2615 = vmatpush3.bf16.msra.mxu0 %v3090_v1 }
  0x44   :  { %2616 = vmatprep.subr.bf16.mxu0 %v2960_v63  ;;  %2612 = vmatpush3.bf16.msra.mxu1 %v3099_v3  ;;  %p2928_p13 = por %p2927_p12, %p2926_p11 }
  0x45   :  { %2619 = vmatprep.subr.bf16.mxu1 %v2960_v63 }
  0x46   :  { %2307 = vmatmul.mubr.msk.f32.gmra.mrb[2].mxu0 %vm94_vm0, %v66_v18  ;;  %p2929_p0 = pnand %p2928_p13, %p2922_p10 }
  0x47   :  { %2442 = vmatprep.mubr.msk.f32.mxu0 %vm2961_vm1, %v2956_v0  ;;  %2618 = vmatpush3.bf16.msra.mxu0 %v3099_v3 }
  0x48   :  { %2625 = vmatprep.subr.bf16.mxu0 %v2960_v63 }
  0xaf   :  { %v195_v32 = vpop.permute.xlu0 %194 }
  0xb3   :  { %v205_v36 = vpop.permute.xlu0 %204 }
 0x115   :  { %v167_v24 = vpop.f32.mrb[0].mxu0 }
 0x116   :  { %v169_v25 = vpop.f32.mrb[1].mxu0  ;;  %v3077_v33 = vadd.f32 %v167_v24, %v87_v31  ;;  %v3136_v24 = vld [vmem:[%s3576_s5] ss:$0 sm:$0xff] }
 0x117   :  { %v170_v26 = vadd.f32 %v169_v25, %v91_v23 }
 0x118   :  { %v197_v34 = vadd.f32 %v195_v32, %v3077_v33 }
 0x119   :  { %v173_v27 = vpop.f32.mrb[2].mxu0  ;;  %219 = vrot.lane.b32.xlu0 %v170_v26, %s2958_s17  ;;  %209 = vrot.lane.b32.xlu1 %v170_v26, %s2957_s14 }
 0x11a   :  { %v175_v28 = vpop.f32.mrb[3].mxu0  ;;  %v3080_v35 = vadd.f32 %v173_v27, %v87_v31  ;;  %v207_v37 = vadd.f32 %v205_v36, %v197_v34  ;;  %v2963_v31 = vmov 97  }
 0x11b   :  { %v176_v29 = vadd.f32 %v175_v28, %v91_v23  ;;  %v2962_v23 = vmov 96  }
 0x11c   :  { %v241_v38 = vadd.f32 %v195_v32, %v3080_v35  ;;  %2728 = vset.pattern.permute.xlu0 %v2962_v23  ;;  %2729 = vset.pattern.permute.xlu1 %v2962_v23 }
 0x11d   :  { %244 = vrot.lane.b32.xlu1 %v176_v29, %s2957_s14 }
 0x11e   :  { %v242_v42 = vadd.f32 %v241_v38, %v205_v36 }
 0x121   :  { %254 = vrot.lane.b32.xlu1 %v176_v29, %s2958_s17 }
 0x18b   :  { %v210_v39 = vpop.permute.xlu1 %209  ;;  %v220_v51 = vpop.permute.xlu0 %219 }
 0x18c   :  { %v212_v40 = vadd.f32 %v210_v39, %v207_v37 }
 0x18e   :  { %v2310_v41 = vmul.f32 -1.442695, %v212_v40 }
 0x18f   :  { %v245_v43 = vpop.permute.xlu1 %244 }
 0x190   :  { %2756 = vpow2.f32 %v2310_v41  ;;  %v247_v44 = vadd.f32 %v245_v43, %v242_v42 }
 0x192   :  { %v2311_v45 = vmul.f32 -1.442695, %v247_v44 }
 0x193   :  { %v255_v54 = vpop.permute.xlu1 %254 }
 0x194   :  { %2758 = vpow2.f32 %v2311_v45  ;;  %v2964_v45 = vmov -0.1  }
 0x19a   :  { %v2757_v46 = vpop.eup %2756 }
 0x19b   :  { %v216_v47 = vadd.f32 1.0, %v2757_v46 }
 0x19d   :  { %2760 = vrcp.f32 %v216_v47 }
 0x19e   :  { %v2759_v48 = vpop.eup %2758 }
 0x19f   :  { %v251_v49 = vadd.f32 1.0, %v2759_v48  ;;  %v2965_v48 = vmov 0.1  }
 0x1a1   :  { %2762 = vrcp.f32 %v251_v49 }
 0x1a7   :  { %v2761_v50 = vpop.eup %2760 }
 0x1a8   :  { %v222_v52 = vmul.f32 %v2761_v50, %v220_v51  ;;  %v229_v7 = vsub.f32 1.0, %v2761_v50 }
 0x1aa   :  { %224 = vrot.lane.b32.xlu0 %v222_v52, %s2959_s2 }
 0x1ab   :  { %v2763_v53 = vpop.eup %2762 }
 0x1ac   :  { %v257_v55 = vmul.f32 %v2763_v53, %v255_v54  ;;  %v264_v15 = vsub.f32 1.0, %v2763_v53 }
 0x1ae   :  { %259 = vrot.lane.b32.xlu1 %v257_v55, %s2959_s2 }
 0x1b2   :  { %236 = vrot.lane.b32.xlu1 %v3077_v33, %s2959_s2 }
 0x1b6   :  { %271 = vrot.lane.b32.xlu1 %v3080_v35, %s2959_s2 }
 0x21c   :  { %v225_v56 = vpop.permute.xlu0 %224 }
 0x21d   :  { %v227_v57 = vadd.f32 %v225_v56, %v207_v37 }
 0x21f   :  { %2764 = vtanh.f32 %v227_v57 }
 0x220   :  { %v260_v58 = vpop.permute.xlu1 %259 }
 0x221   :  { %v262_v59 = vadd.f32 %v260_v58, %v242_v42  ;;  %v179_v42 = vand.u32 127, %v84_v19 }
 0x223   :  { %2766 = vtanh.f32 %v262_v59  ;;  %vm181_vm2 = vcmp.eq.s32.totalorder %v179_v42, 2  ;;  %vm182_vm3 = vcmp.eq.s32.totalorder %v179_v42, 5  ;;  %vm180_vm5 = vcmp.lt.s32.totalorder %v179_v42, 2 }
 0x224   :  { %v237_v6 = vpop.permute.xlu1 %236  ;;  %vm183_vm4 = vmor %vm181_vm2, %vm182_vm3 }
 0x225   :  { %v239_v9 = vmul.f32 %v2761_v50, %v237_v6  ;;  %v184_v46 = vsel %vm183_vm4, 0.2, %v2964_v45  ;;  %v186_v49 = vsel %vm183_vm4, 1.0, %v2965_v48 }
 0x226   :  { %v3158_v52 = vsel %vm180_vm5, -inf, %v184_v46  ;;  %v3161_v19 = vsel %vm180_vm5, inf, %v186_v49 }
 0x228   :  { %v272_v11 = vpop.permute.xlu1 %271 }
 0x229   :  { %v2765_v4 = vpop.eup %2764  ;;  %v274_v17 = vmul.f32 %v2763_v53, %v272_v11 }
 0x22a   :  { %231 = vrot.lane.b32.xlu0 %v2765_v4, %s2958_s17 }
 0x22d   :  { %v2767_v5 = vpop.eup %2766 }
 0x22e   :  { %266 = vrot.lane.b32.xlu0 %v2767_v5, %s2958_s17 }
 0x29c   :  { %v232_v8 = vpop.permute.xlu0 %231 }
 0x29d   :  { %v234_v10 = vmul.f32 %v232_v8, %v229_v7 }
 0x29f   :  { %v3109_v14 = vadd.f32 %v239_v9, %v234_v10 }
 0x2a0   :  { %v267_v16 = vpop.permute.xlu0 %266 }
 0x2a1   :  { %v269_v18 = vmul.f32 %v267_v16, %v264_v15  ;;  %283 = vrot.lane.b32.xlu0 %v3109_v14, %s2959_s2 }
 0x2a3   :  { %v3113_v20 = vadd.f32 %v274_v17, %v269_v18 }
 0x2a5   :  { %358 = vrot.lane.b32.xlu1 %v3113_v20, %s2959_s2 }
 0x313   :  { %v284_v21 = vpop.permute.xlu0 %283 }
 0x314   :  { %2432 = vmatmul.mubr.msk.f32.vlgmr.msra.gmra.mrb[0].mxu1 %vm94_vm0, %v284_v21 }
 0x315   :  { %2621 = vmatpush3.bf16.msra.mxu1 %v3090_v1  ;;  %2453 = vmatprep.mubr.msk.f32.mxu1 %vm2961_vm1, %v2956_v0 }
 0x316   :  { %2622 = vmatprep.subr.bf16.mxu1 %v2960_v63 }
 0x317   :  { %v359_v22 = vpop.permute.xlu1 %358 }
 0x318   :  { %2443 = vmatmul.mubr.msk.f32.vlgmr.msra.gmra.mrb[4].mxu0 %vm94_vm0, %v359_v22 }
 0x319   :  { %2627 = vmatpush3.bf16.msra.mxu0 %v3090_v1  ;;  %2624 = vmatpush3.bf16.msra.mxu1 %v3099_v3 }
 0x31a   :  { %2628 = vmatprep.subr.bf16.mxu0 %v2960_v63  ;;  %2464 = vmatprep.mubr.msk.f32.mxu0 %vm2961_vm1, %v2956_v0 }
 0x31b   :  { %2631 = vmatprep.subr.bf16.mxu1 %v2960_v63 }
 0x31d   :  { %2630 = vmatpush3.bf16.msra.mxu0 %v3099_v3 }
 0x31e   :  { %2637 = vmatprep.subr.bf16.mxu0 %v2960_v63 }
 0x3e7   :  { %v353_v25 = vpop.f32.mrb[0].mxu1 }
 0x3e8   :  { %v354_v26 = vadd.f32 %v3136_v24, %v353_v25  ;;  %v2433_v27 = vpop.f32.mrb[1].mxu1 }
 0x3ea   :  { %448 = vperm.xlu0 %2728, %v354_v26  }
 0x3eb   :  { %v428_v28 = vpop.f32.mrb[4].mxu0 }
 0x3ec   :  { %v429_v29 = vadd.f32 %v3136_v24, %v428_v28  ;;  %v2444_v30 = vpop.f32.mrb[5].mxu0 }
 0x3ee   :  { %493 = vperm.xlu1 %2729, %v429_v29   ;;  %2731 = vset.pattern.permute.xlu0 %v2963_v31 }
 0x3ef   :  { %503 = vperm.xlu0 %2731, %v429_v29  }
 0x3f2   :  { %2730 = vset.pattern.permute.xlu1 %v2963_v31 }
 0x3f3   :  { %458 = vperm.xlu1 %2730, %v354_v26   ;;  %2732 = vset.pattern.permute.xlu0 %v2962_v23 }
 0x3f7   :  { %2733 = vset.pattern.permute.xlu1 %v2962_v23 }
 0x469   :  { %v449_v32 = vpop.permute.xlu0 %448 }
 0x46a   :  { %v451_v34 = vmul.f32 %v3055_v12, %v449_v32 }
 0x46c   :  { %453 = vrot.lane.b32.xlu1 %v451_v34, %s2957_s14 }
 0x46d   :  { %v494_v36 = vpop.permute.xlu1 %493 }
 0x46e   :  { %v496_v37 = vmul.f32 %v3055_v12, %v494_v36  ;;  %v504_v38 = vpop.permute.xlu0 %503 }
 0x46f   :  { %v506_v39 = vmul.f32 %v3060_v13, %v504_v38 }
 0x470   :  { %498 = vrot.lane.b32.xlu1 %v496_v37, %s2957_s14 }
 0x472   :  { %v459_v40 = vpop.permute.xlu1 %458 }
 0x473   :  { %v461_v41 = vmul.f32 %v3060_v13, %v459_v40 }
 0x474   :  { %508 = vrot.lane.b32.xlu1 %v506_v39, %s2957_s14 }
 0x475   :  { %463 = vrot.lane.b32.xlu0 %v461_v41, %s2957_s14 }
 0x478   :  { %441 = vrot.lane.b32.xlu1 %v429_v29, %s2957_s14 }
 0x479   :  { %433 = vrot.lane.b32.xlu0 %v354_v26, %s2957_s14 }
 0x47c   :  { %519 = vrot.lane.b32.xlu1 %v429_v29, %s2958_s17 }
 0x47d   :  { %474 = vrot.lane.b32.xlu0 %v354_v26, %s2958_s17 }
 0x4de   :  { %v454_v43 = vpop.permute.xlu1 %453 }
 0x4df   :  { %v456_v53 = vadd.f32 %v454_v43, %v3077_v33 }
 0x4e2   :  { %v499_v44 = vpop.permute.xlu1 %498 }
 0x4e3   :  { %v501_v50 = vadd.f32 %v499_v44, %v3080_v35 }
 0x4e6   :  { %v509_v47 = vpop.permute.xlu1 %508 }
 0x4e7   :  { %v464_v51 = vpop.permute.xlu0 %463  ;;  %v511_v54 = vadd.f32 %v509_v47, %v501_v50 }
 0x4e8   :  { %v466_v55 = vadd.f32 %v464_v51, %v456_v53 }
 0x4ea   :  { %v442_v56 = vpop.permute.xlu1 %441 }
 0x4eb   :  { %v444_v57 = vmax.f32 %v3158_v52, %v442_v56  ;;  %v512_v58 = vadd.f32 %v511_v54, %v442_v56  ;;  %v434_v59 = vpop.permute.xlu0 %433 }
 0x4ec   :  { %v436_v60 = vmax.f32 %v3158_v52, %v434_v59  ;;  %v467_v61 = vadd.f32 %v466_v55, %v434_v59 }
 0x4ed   :  { %v445_v62 = vmin.f32 %v3161_v19, %v444_v57  ;;  %v2316_v2 = vmul.f32 -1.442695, %v512_v58 }
 0x4ee   :  { %v437_v4 = vmin.f32 %v3161_v19, %v436_v60  ;;  %v2315_v5 = vmul.f32 -1.442695, %v467_v61  ;;  %v520_v11 = vpop.permute.xlu1 %519 }
 0x4ef   :  { %2768 = vpow2.f32 %v2316_v2  ;;  %446 = vst.msk [vmem:[#allocation8 + $0x8] sm:$0xff] %vm438_vm6, %v445_v62  ;;  %v475_v17 = vpop.permute.xlu0 %474 }
 0x4f0   :  { %2770 = vpow2.f32 %v2315_v5  ;;  %439 = vst.msk [vmem:[#allocation8] sm:$0xff] %vm438_vm6, %v437_v4 }
 0x4f9   :  { %v2769_v6 = vpop.eup %2768 }
 0x4fa   :  { %v2771_v7 = vpop.eup %2770  ;;  %v516_v8 = vadd.f32 1.0, %v2769_v6 }
 0x4fb   :  { %v471_v9 = vadd.f32 1.0, %v2771_v7 }
 0x4fc   :  { %2772 = vrcp.f32 %v516_v8 }
 0x4fd   :  { %2774 = vrcp.f32 %v471_v9 }
 0x506   :  { %v2773_v10 = vpop.eup %2772 }
 0x507   :  { %v2775_v15 = vpop.eup %2774  ;;  %v522_v16 = vmul.f32 %v2773_v10, %v520_v11  ;;  %v529_v29 = vsub.f32 1.0, %v2773_v10  ;;  %v535_v34 = vmul.f32 %v2773_v10, %v3113_v20 }
 0x508   :  { %v477_v18 = vmul.f32 %v2775_v15, %v475_v17  ;;  %v484_v32 = vsub.f32 1.0, %v2775_v15  ;;  %v490_v38 = vmul.f32 %v2775_v15, %v3109_v14 }
 0x509   :  { %524 = vrot.lane.b32.xlu1 %v522_v16, %s2959_s2 }
 0x50a   :  { %479 = vrot.lane.b32.xlu0 %v477_v18, %s2959_s2 }
 0x57b   :  { %v525_v21 = vpop.permute.xlu1 %524 }
 0x57c   :  { %v527_v22 = vadd.f32 %v525_v21, %v511_v54  ;;  %v480_v25 = vpop.permute.xlu0 %479 }
 0x57d   :  { %v482_v26 = vadd.f32 %v480_v25, %v466_v55 }
 0x57e   :  { %2776 = vtanh.f32 %v527_v22 }
 0x57f   :  { %2778 = vtanh.f32 %v482_v26 }
 0x588   :  { %v2777_v27 = vpop.eup %2776 }
 0x589   :  { %v2779_v28 = vpop.eup %2778  ;;  %531 = vrot.lane.b32.xlu1 %v2777_v27, %s2958_s17 }
 0x58a   :  { %486 = vrot.lane.b32.xlu0 %v2779_v28, %s2958_s17 }
 0x5fb   :  { %v532_v30 = vpop.permute.xlu1 %531 }
 0x5fc   :  { %v534_v36 = vmul.f32 %v532_v30, %v529_v29  ;;  %v487_v37 = vpop.permute.xlu0 %486 }
 0x5fd   :  { %v489_v39 = vmul.f32 %v487_v37, %v484_v32 }
 0x5fe   :  { %v3173_v40 = vadd.f32 %v535_v34, %v534_v36 }
 0x5ff   :  { %v3175_v41 = vadd.f32 %v490_v38, %v489_v39 }
 0x600   :  { %613 = vrot.lane.b32.xlu1 %v3173_v40, %s2959_s2 }
 0x601   :  { %538 = vrot.lane.b32.xlu0 %v3175_v41, %s2959_s2 }
 0x672   :  { %v614_v42 = vpop.permute.xlu1 %613 }
 0x673   :  { %2465 = vmatmul.mubr.msk.f32.vlgmr.msra.gmra.mrb[6].mxu0 %vm94_vm0, %v614_v42  ;;  %v539_v43 = vpop.permute.xlu0 %538 }
 0x674   :  { %2454 = vmatmul.mubr.msk.f32.vlgmr.msra.gmra.mrb[2].mxu1 %vm94_vm0, %v539_v43  ;;  %2639 = vmatpush3.bf16.msra.mxu0 %v3090_v1 }
 0x675   :  { %2633 = vmatpush3.bf16.msra.mxu1 %v3090_v1  ;;  %2475 = vmatprep.mubr.msk.f32.mxu1 %vm2961_vm1, %v2956_v0 }
 0x676   :  { %2634 = vmatprep.subr.bf16.mxu1 %v2960_v63  ;;  %2640 = vmatprep.subr.bf16.mxu0 %v2960_v63 }
 0x677   :  { %2486 = vmatprep.mubr.msk.f32.mxu0 %vm2961_vm1, %v2956_v0 }
 0x678   :  { %2642 = vmatpush3.bf16.msra.mxu0 %v3099_v3 }
 0x679   :  { %2636 = vmatpush3.bf16.msra.mxu1 %v3099_v3  ;;  %2649 = vmatprep.subr.bf16.mxu0 %v2960_v63 }
 0x67a   :  { %2643 = vmatprep.subr.bf16.mxu1 %v2960_v63 }
 0x746   :  { %v683_v14 = vpop.f32.mrb[6].mxu0 }
 0x747   :  { %v684_v20 = vadd.f32 %v3136_v24, %v683_v14  ;;  %v608_v44 = vpop.f32.mrb[2].mxu1  ;;  %v2466_v45 = vpop.f32.mrb[7].mxu0 }
 0x748   :  { %v609_v46 = vadd.f32 %v3136_v24, %v608_v44  ;;  %v2455_v47 = vpop.f32.mrb[3].mxu1 }
 0x749   :  { %756 = vperm.xlu1 %2733, %v684_v20  }
 0x74a   :  { %711 = vperm.xlu0 %2732, %v609_v46  }
 0x74d   :  { %2734 = vset.pattern.permute.xlu1 %v2963_v31 }
 0x74e   :  { %721 = vperm.xlu1 %2734, %v609_v46   ;;  %2735 = vset.pattern.permute.xlu0 %v2963_v31 }
 0x74f   :  { %766 = vperm.xlu0 %2735, %v684_v20  }
 0x752   :  { %2737 = vset.pattern.permute.xlu1 %v2962_v23 }
 0x753   :  { %2736 = vset.pattern.permute.xlu0 %v2962_v23 }
 0x7c8   :  { %v757_v48 = vpop.permute.xlu1 %756 }
 0x7c9   :  { %v712_v49 = vpop.permute.xlu0 %711  ;;  %v759_v53 = vmul.f32 %v3055_v12, %v757_v48 }
 0x7ca   :  { %v714_v50 = vmul.f32 %v3055_v12, %v712_v49 }
 0x7cc   :  { %716 = vrot.lane.b32.xlu1 %v714_v50, %s2957_s14 }
 0x7cd   :  { %v722_v51 = vpop.permute.xlu1 %721 }
 0x7ce   :  { %v724_v54 = vmul.f32 %v3060_v13, %v722_v51  ;;  %v767_v55 = vpop.permute.xlu0 %766 }
 0x7cf   :  { %v769_v56 = vmul.f32 %v3060_v13, %v767_v55 }
 0x7d0   :  { %726 = vrot.lane.b32.xlu0 %v724_v54, %s2957_s14  ;;  %761 = vrot.lane.b32.xlu1 %v759_v53, %s2957_s14 }
 0x7d4   :  { %688 = vrot.lane.b32.xlu0 %v609_v46, %s2957_s14  ;;  %771 = vrot.lane.b32.xlu1 %v769_v56, %s2957_s14 }
 0x7d8   :  { %737 = vrot.lane.b32.xlu0 %v609_v46, %s2958_s17  ;;  %700 = vrot.lane.b32.xlu1 %v684_v20, %s2957_s14 }
 0x7dc   :  { %782 = vrot.lane.b32.xlu1 %v684_v20, %s2958_s17 }
 0x83e   :  { %v717_v57 = vpop.permute.xlu1 %716 }
 0x83f   :  { %v719_v60 = vadd.f32 %v717_v57, %v3077_v33 }
 0x842   :  { %v762_v58 = vpop.permute.xlu1 %761  ;;  %v727_v59 = vpop.permute.xlu0 %726 }
 0x843   :  { %v729_v61 = vadd.f32 %v727_v59, %v719_v60  ;;  %v764_v4 = vadd.f32 %v762_v58, %v3080_v35 }
 0x846   :  { %v772_v62 = vpop.permute.xlu1 %771  ;;  %v3214_v2 = vpop.permute.xlu0 %688 }
 0x847   :  { %v730_v5 = vadd.f32 %v729_v61, %v3214_v2  ;;  %v774_v6 = vadd.f32 %v772_v62, %v764_v4 }
 0x849   :  { %v2319_v7 = vmul.f32 -1.442695, %v730_v5 }
 0x84a   :  { %v3218_v8 = vpop.permute.xlu1 %700  ;;  %v738_v21 = vpop.permute.xlu0 %737 }
 0x84b   :  { %2780 = vpow2.f32 %v2319_v7  ;;  %v775_v9 = vadd.f32 %v774_v6, %v3218_v8 }
 0x84d   :  { %v2320_v10 = vmul.f32 -1.442695, %v775_v9 }
 0x84e   :  { %v783_v26 = vpop.permute.xlu1 %782 }
 0x84f   :  { %2782 = vpow2.f32 %v2320_v10 }
 0x855   :  { %v2781_v11 = vpop.eup %2780 }
 0x856   :  { %v734_v15 = vadd.f32 1.0, %v2781_v11 }
 0x858   :  { %2784 = vrcp.f32 %v734_v15 }
 0x859   :  { %v2783_v16 = vpop.eup %2782 }
 0x85a   :  { %v779_v17 = vadd.f32 1.0, %v2783_v16 }
 0x85c   :  { %2786 = vrcp.f32 %v779_v17 }
 0x862   :  { %v2785_v18 = vpop.eup %2784 }
 0x863   :  { %v740_v22 = vmul.f32 %v2785_v18, %v738_v21  ;;  %v747_v37 = vsub.f32 1.0, %v2785_v18  ;;  %v753_v39 = vmul.f32 %v2785_v18, %v3175_v41 }
 0x865   :  { %742 = vrot.lane.b32.xlu0 %v740_v22, %s2959_s2 }
 0x866   :  { %v2787_v25 = vpop.eup %2786 }
 0x867   :  { %v785_v27 = vmul.f32 %v2787_v25, %v783_v26  ;;  %v792_v14 = vsub.f32 1.0, %v2787_v25  ;;  %v798_v44 = vmul.f32 %v2787_v25, %v3173_v40 }
 0x869   :  { %787 = vrot.lane.b32.xlu1 %v785_v27, %s2959_s2 }
 0x8d7   :  { %v743_v28 = vpop.permute.xlu0 %742 }
 0x8d8   :  { %v745_v29 = vadd.f32 %v743_v28, %v729_v61 }
 0x8da   :  { %2788 = vtanh.f32 %v745_v29 }
 0x8db   :  { %v788_v30 = vpop.permute.xlu1 %787 }
 0x8dc   :  { %v790_v32 = vadd.f32 %v788_v30, %v774_v6 }
 0x8de   :  { %2790 = vtanh.f32 %v790_v32 }
 0x8e4   :  { %v2789_v34 = vpop.eup %2788 }
 0x8e5   :  { %749 = vrot.lane.b32.xlu0 %v2789_v34, %s2958_s17 }
 0x8e8   :  { %v2791_v36 = vpop.eup %2790 }
 0x8e9   :  { %794 = vrot.lane.b32.xlu1 %v2791_v36, %s2958_s17 }
 0x957   :  { %v750_v38 = vpop.permute.xlu0 %749 }
 0x958   :  { %v752_v42 = vmul.f32 %v750_v38, %v747_v37 }
 0x95a   :  { %v3226_v43 = vadd.f32 %v753_v39, %v752_v42 }
 0x95b   :  { %v795_v20 = vpop.permute.xlu1 %794 }
 0x95c   :  { %v797_v45 = vmul.f32 %v795_v20, %v792_v14  ;;  %801 = vrot.lane.b32.xlu0 %v3226_v43, %s2959_s2 }
 0x95e   :  { %v3231_v46 = vadd.f32 %v798_v44, %v797_v45 }
 0x960   :  { %876 = vrot.lane.b32.xlu1 %v3231_v46, %s2959_s2 }
 0x9ce   :  { %v802_v47 = vpop.permute.xlu0 %801 }
 0x9cf   :  { %2476 = vmatmul.mubr.msk.f32.vlgmr.msra.gmra.mrb[4].mxu1 %vm94_vm0, %v802_v47 }
 0x9d0   :  { %2645 = vmatpush3.bf16.msra.mxu1 %v3090_v1  ;;  %2497 = vmatprep.mubr.msk.f32.mxu1 %vm2961_vm1, %v2956_v0 }
 0x9d1   :  { %2646 = vmatprep.subr.bf16.mxu1 %v2960_v63 }
 0x9d2   :  { %v877_v40 = vpop.permute.xlu1 %876 }
 0x9d3   :  { %2487 = vmatmul.mubr.msk.f32.vlgmr.msra.gmra.mrb[8].mxu0 %vm94_vm0, %v877_v40 }
 0x9d4   :  { %2651 = vmatpush3.bf16.msra.mxu0 %v3090_v1  ;;  %2648 = vmatpush3.bf16.msra.mxu1 %v3099_v3 }
 0x9d5   :  { %2652 = vmatprep.subr.bf16.mxu0 %v2960_v63  ;;  %2508 = vmatprep.mubr.msk.f32.mxu0 %vm2961_vm1, %v2956_v0 }
 0x9d6   :  { %2655 = vmatprep.subr.bf16.mxu1 %v2960_v63 }
 0x9d8   :  { %2654 = vmatpush3.bf16.msra.mxu0 %v3099_v3 }
 0x9d9   :  { %2661 = vmatprep.subr.bf16.mxu0 %v2960_v63 }
 0xaa2   :  { %v871_v41 = vpop.f32.mrb[4].mxu1 }
 0xaa3   :  { %v872_v48 = vadd.f32 %v3136_v24, %v871_v41  ;;  %v2477_v49 = vpop.f32.mrb[5].mxu1 }
 0xaa5   :  { %974 = vperm.xlu0 %2736, %v872_v48  }
 0xaa6   :  { %v946_v50 = vpop.f32.mrb[8].mxu0 }
 0xaa7   :  { %v947_v51 = vadd.f32 %v3136_v24, %v946_v50  ;;  %v2488_v53 = vpop.f32.mrb[9].mxu0 }
 0xaa9   :  { %1019 = vperm.xlu1 %2737, %v947_v51   ;;  %2739 = vset.pattern.permute.xlu0 %v2963_v31 }
 0xaaa   :  { %1029 = vperm.xlu0 %2739, %v947_v51  }
 0xaad   :  { %2738 = vset.pattern.permute.xlu1 %v2963_v31 }
 0xaae   :  { %984 = vperm.xlu1 %2738, %v872_v48   ;;  %2740 = vset.pattern.permute.xlu0 %v2962_v23 }
 0xab2   :  { %2741 = vset.pattern.permute.xlu1 %v2962_v23 }
 0xb24   :  { %v975_v54 = vpop.permute.xlu0 %974 }
 0xb25   :  { %v977_v55 = vmul.f32 %v3055_v12, %v975_v54 }
 0xb27   :  { %979 = vrot.lane.b32.xlu1 %v977_v55, %s2957_s14 }
 0xb28   :  { %v1020_v56 = vpop.permute.xlu1 %1019 }
 0xb29   :  { %v1022_v57 = vmul.f32 %v3055_v12, %v1020_v56  ;;  %v1030_v58 = vpop.permute.xlu0 %1029 }
 0xb2a   :  { %v1032_v59 = vmul.f32 %v3060_v13, %v1030_v58 }
 0xb2b   :  { %1024 = vrot.lane.b32.xlu1 %v1022_v57, %s2957_s14 }
 0xb2d   :  { %v985_v60 = vpop.permute.xlu1 %984 }
 0xb2e   :  { %v987_v61 = vmul.f32 %v3060_v13, %v985_v60 }
 0xb2f   :  { %1034 = vrot.lane.b32.xlu1 %v1032_v59, %s2957_s14 }
 0xb30   :  { %989 = vrot.lane.b32.xlu0 %v987_v61, %s2957_s14 }
 0xb33   :  { %963 = vrot.lane.b32.xlu1 %v947_v51, %s2957_s14 }
 0xb34   :  { %951 = vrot.lane.b32.xlu0 %v872_v48, %s2957_s14 }
 0xb37   :  { %1045 = vrot.lane.b32.xlu1 %v947_v51, %s2958_s17 }
 0xb38   :  { %1000 = vrot.lane.b32.xlu0 %v872_v48, %s2958_s17 }
 0xb99   :  { %v980_v62 = vpop.permute.xlu1 %979 }
 0xb9a   :  { %v982_v9 = vadd.f32 %v980_v62, %v3077_v33 }
 0xb9d   :  { %v1025_v4 = vpop.permute.xlu1 %1024 }
 0xb9e   :  { %v1027_v6 = vadd.f32 %v1025_v4, %v3080_v35 }
 0xba1   :  { %v1035_v5 = vpop.permute.xlu1 %1034 }
 0xba2   :  { %v990_v7 = vpop.permute.xlu0 %989  ;;  %v1037_v10 = vadd.f32 %v1035_v5, %v1027_v6 }
 0xba3   :  { %v992_v11 = vadd.f32 %v990_v7, %v982_v9 }
 0xba5   :  { %v3269_v15 = vpop.permute.xlu1 %963 }
 0xba6   :  { %v1038_v16 = vadd.f32 %v1037_v10, %v3269_v15  ;;  %v3272_v17 = vpop.permute.xlu0 %951 }
 0xba7   :  { %v993_v18 = vadd.f32 %v992_v11, %v3272_v17 }
 0xba8   :  { %v2324_v21 = vmul.f32 -1.442695, %v1038_v16 }
 0xba9   :  { %v2323_v22 = vmul.f32 -1.442695, %v993_v18  ;;  %v1046_v30 = vpop.permute.xlu1 %1045 }
 0xbaa   :  { %2792 = vpow2.f32 %v2324_v21  ;;  %v1001_v36 = vpop.permute.xlu0 %1000 }
 0xbab   :  { %2794 = vpow2.f32 %v2323_v22 }
 0xbb4   :  { %v2793_v25 = vpop.eup %2792 }
 0xbb5   :  { %v2795_v26 = vpop.eup %2794  ;;  %v1042_v27 = vadd.f32 1.0, %v2793_v25 }
 0xbb6   :  { %v997_v28 = vadd.f32 1.0, %v2795_v26 }
 0xbb7   :  { %2796 = vrcp.f32 %v1042_v27 }
 0xbb8   :  { %2798 = vrcp.f32 %v997_v28 }
 0xbc1   :  { %v2797_v29 = vpop.eup %2796 }
 0xbc2   :  { %v2799_v32 = vpop.eup %2798  ;;  %v1048_v34 = vmul.f32 %v2797_v29, %v1046_v30  ;;  %v1055_v45 = vsub.f32 1.0, %v2797_v29  ;;  %v1061_v41 = vmul.f32 %v2797_v29, %v3231_v46 }
 0xbc3   :  { %v1003_v37 = vmul.f32 %v2799_v32, %v1001_v36  ;;  %v1010_v40 = vsub.f32 1.0, %v2799_v32  ;;  %v1016_v50 = vmul.f32 %v2799_v32, %v3226_v43 }
 0xbc4   :  { %1050 = vrot.lane.b32.xlu1 %v1048_v34, %s2959_s2 }
 0xbc5   :  { %1005 = vrot.lane.b32.xlu0 %v1003_v37, %s2959_s2 }
 0xc36   :  { %v1051_v38 = vpop.permute.xlu1 %1050 }
 0xc37   :  { %v1053_v39 = vadd.f32 %v1051_v38, %v1037_v10  ;;  %v1006_v42 = vpop.permute.xlu0 %1005 }
 0xc38   :  { %v1008_v14 = vadd.f32 %v1006_v42, %v992_v11 }
 0xc39   :  { %2800 = vtanh.f32 %v1053_v39 }
 0xc3a   :  { %2802 = vtanh.f32 %v1008_v14 }
 0xc43   :  { %v2801_v20 = vpop.eup %2800 }
 0xc44   :  { %v2803_v44 = vpop.eup %2802  ;;  %1057 = vrot.lane.b32.xlu1 %v2801_v20, %s2958_s17 }
 0xc45   :  { %1012 = vrot.lane.b32.xlu0 %v2803_v44, %s2958_s17 }
 0xcb6   :  { %v1058_v47 = vpop.permute.xlu1 %1057 }
 0xcb7   :  { %v1060_v48 = vmul.f32 %v1058_v47, %v1055_v45  ;;  %v1013_v49 = vpop.permute.xlu0 %1012 }
 0xcb8   :  { %v1015_v51 = vmul.f32 %v1013_v49, %v1010_v40 }
 0xcb9   :  { %v3281_v53 = vadd.f32 %v1061_v41, %v1060_v48 }
 0xcba   :  { %v3283_v54 = vadd.f32 %v1016_v50, %v1015_v51 }
 0xcbb   :  { %1139 = vrot.lane.b32.xlu1 %v3281_v53, %s2959_s2 }
 0xcbc   :  { %1064 = vrot.lane.b32.xlu0 %v3283_v54, %s2959_s2 }
 0xd2d   :  { %v1140_v55 = vpop.permute.xlu1 %1139 }
 0xd2e   :  { %2509 = vmatmul.mubr.msk.f32.vlgmr.msra.gmra.mrb[10].mxu0 %vm94_vm0, %v1140_v55  ;;  %v1065_v56 = vpop.permute.xlu0 %1064 }
 0xd2f   :  { %2498 = vmatmul.mubr.msk.f32.vlgmr.msra.gmra.mrb[6].mxu1 %vm94_vm0, %v1065_v56  ;;  %2663 = vmatpush3.bf16.msra.mxu0 %v3090_v1 }
 0xd30   :  { %2657 = vmatpush3.bf16.msra.mxu1 %v3090_v1  ;;  %2519 = vmatprep.mubr.msk.f32.mxu1 %vm2961_vm1, %v2956_v0 }
 0xd31   :  { %2658 = vmatprep.subr.bf16.mxu1 %v2960_v63  ;;  %2664 = vmatprep.subr.bf16.mxu0 %v2960_v63 }
 0xd32   :  { %2530 = vmatprep.mubr.msk.f32.mxu0 %vm2961_vm1, %v2956_v0 }
 0xd33   :  { %2666 = vmatpush3.bf16.msra.mxu0 %v3099_v3 }
 0xd34   :  { %2660 = vmatpush3.bf16.msra.mxu1 %v3099_v3  ;;  %2673 = vmatprep.subr.bf16.mxu0 %v2960_v63 }
 0xd35   :  { %2667 = vmatprep.subr.bf16.mxu1 %v2960_v63 }
 0xe01   :  { %v1209_v43 = vpop.f32.mrb[10].mxu0 }
 0xe02   :  { %v1210_v46 = vadd.f32 %v3136_v24, %v1209_v43  ;;  %v1134_v57 = vpop.f32.mrb[6].mxu1  ;;  %v2510_v58 = vpop.f32.mrb[11].mxu0 }
 0xe03   :  { %v1135_v59 = vadd.f32 %v3136_v24, %v1134_v57  ;;  %v2499_v60 = vpop.f32.mrb[7].mxu1 }
 0xe04   :  { %1282 = vperm.xlu1 %2741, %v1210_v46  }
 0xe05   :  { %1237 = vperm.xlu0 %2740, %v1135_v59  }
 0xe08   :  { %2742 = vset.pattern.permute.xlu1 %v2963_v31 }
 0xe09   :  { %1247 = vperm.xlu1 %2742, %v1135_v59   ;;  %2743 = vset.pattern.permute.xlu0 %v2963_v31 }
 0xe0a   :  { %1292 = vperm.xlu0 %2743, %v1210_v46  }
 0xe0d   :  { %2745 = vset.pattern.permute.xlu1 %v2962_v23 }
 0xe0e   :  { %2744 = vset.pattern.permute.xlu0 %v2962_v23 }
 0xe83   :  { %v1283_v61 = vpop.permute.xlu1 %1282 }
 0xe84   :  { %v1238_v62 = vpop.permute.xlu0 %1237  ;;  %v1285_v6 = vmul.f32 %v3055_v12, %v1283_v61 }
 0xe85   :  { %v1240_v4 = vmul.f32 %v3055_v12, %v1238_v62 }
 0xe87   :  { %1242 = vrot.lane.b32.xlu1 %v1240_v4, %s2957_s14 }
 0xe88   :  { %v1248_v5 = vpop.permute.xlu1 %1247 }
 0xe89   :  { %v1250_v7 = vmul.f32 %v3060_v13, %v1248_v5  ;;  %v1293_v9 = vpop.permute.xlu0 %1292 }
 0xe8a   :  { %v1295_v10 = vmul.f32 %v3060_v13, %v1293_v9 }
 0xe8b   :  { %1252 = vrot.lane.b32.xlu0 %v1250_v7, %s2957_s14  ;;  %1287 = vrot.lane.b32.xlu1 %v1285_v6, %s2957_s14 }
 0xe8f   :  { %1214 = vrot.lane.b32.xlu0 %v1135_v59, %s2957_s14  ;;  %1297 = vrot.lane.b32.xlu1 %v1295_v10, %s2957_s14 }
 0xe93   :  { %1263 = vrot.lane.b32.xlu0 %v1135_v59, %s2958_s17  ;;  %1226 = vrot.lane.b32.xlu1 %v1210_v46, %s2957_s14 }
 0xe97   :  { %1308 = vrot.lane.b32.xlu1 %v1210_v46, %s2958_s17 }
 0xef9   :  { %v1243_v12 = vpop.permute.xlu1 %1242 }
 0xefa   :  { %v1245_v18 = vadd.f32 %v1243_v12, %v3077_v33  ;;  %v3366_v12 = vld [vmem:[%s3574_s3] ss:$0 sm:$0xff] }
 0xefd   :  { %v1288_v11 = vpop.permute.xlu1 %1287  ;;  %v1253_v16 = vpop.permute.xlu0 %1252 }
 0xefe   :  { %v1255_v21 = vadd.f32 %v1253_v16, %v1245_v18  ;;  %v1290_v13 = vadd.f32 %v1288_v11, %v3080_v35 }
 0xf01   :  { %v1298_v22 = vpop.permute.xlu1 %1297  ;;  %v3322_v25 = vpop.permute.xlu0 %1214 }
 0xf02   :  { %v1256_v26 = vadd.f32 %v1255_v21, %v3322_v25  ;;  %v1300_v27 = vadd.f32 %v1298_v22, %v1290_v13  ;;  %v3375_v22 = vld [vmem:[%s3574_s3 + $0x1] ss:$0 sm:$0xff] }
 0xf04   :  { %v2327_v28 = vmul.f32 -1.442695, %v1256_v26 }
 0xf05   :  { %v3326_v29 = vpop.permute.xlu1 %1226  ;;  %v1264_v42 = vpop.permute.xlu0 %1263 }
 0xf06   :  { %2804 = vpow2.f32 %v2327_v28  ;;  %v1301_v30 = vadd.f32 %v1300_v27, %v3326_v29 }
 0xf08   :  { %v2328_v32 = vmul.f32 -1.442695, %v1301_v30 }
 0xf09   :  { %v1309_v44 = vpop.permute.xlu1 %1308 }
 0xf0a   :  { %2806 = vpow2.f32 %v2328_v32 }
 0xf10   :  { %v2805_v34 = vpop.eup %2804 }
 0xf11   :  { %v1260_v36 = vadd.f32 1.0, %v2805_v34 }
 0xf13   :  { %2808 = vrcp.f32 %v1260_v36 }
 0xf14   :  { %v2807_v37 = vpop.eup %2806 }
 0xf15   :  { %v1305_v38 = vadd.f32 1.0, %v2807_v37 }
 0xf17   :  { %2810 = vrcp.f32 %v1305_v38 }
 0xf1d   :  { %v2809_v39 = vpop.eup %2808 }
 0xf1e   :  { %v1266_v14 = vmul.f32 %v2809_v39, %v1264_v42  ;;  %v1273_v51 = vsub.f32 1.0, %v2809_v39  ;;  %v1279_v56 = vmul.f32 %v2809_v39, %v3283_v54 }
 0xf20   :  { %1268 = vrot.lane.b32.xlu0 %v1266_v14, %s2959_s2 }
 0xf21   :  { %v2811_v20 = vpop.eup %2810 }
 0xf22   :  { %v1311_v45 = vmul.f32 %v2811_v20, %v1309_v44  ;;  %v1318_v57 = vsub.f32 1.0, %v2811_v20  ;;  %v1324_v59 = vmul.f32 %v2811_v20, %v3281_v53 }
 0xf24   :  { %1313 = vrot.lane.b32.xlu1 %v1311_v45, %s2959_s2 }
 0xf92   :  { %v1269_v47 = vpop.permute.xlu0 %1268 }
 0xf93   :  { %v1271_v40 = vadd.f32 %v1269_v47, %v1255_v21 }
 0xf95   :  { %2812 = vtanh.f32 %v1271_v40 }
 0xf96   :  { %v1314_v41 = vpop.permute.xlu1 %1313 }
 0xf97   :  { %v1316_v48 = vadd.f32 %v1314_v41, %v1300_v27 }
 0xf99   :  { %2814 = vtanh.f32 %v1316_v48 }
 0xf9f   :  { %v2813_v49 = vpop.eup %2812 }
 0xfa0   :  { %1275 = vrot.lane.b32.xlu0 %v2813_v49, %s2958_s17 }
 0xfa3   :  { %v2815_v50 = vpop.eup %2814 }
 0xfa4   :  { %1320 = vrot.lane.b32.xlu1 %v2815_v50, %s2958_s17 }
0x1012   :  { %v1276_v55 = vpop.permute.xlu0 %1275 }
0x1013   :  { %v1278_v43 = vmul.f32 %v1276_v55, %v1273_v51 }
0x1015   :  { %v3334_v46 = vadd.f32 %v1279_v56, %v1278_v43 }
0x1016   :  { %v1321_v58 = vpop.permute.xlu1 %1320 }
0x1017   :  { %v1323_v60 = vmul.f32 %v1321_v58, %v1318_v57  ;;  %1327 = vrot.lane.b32.xlu0 %v3334_v46, %s2959_s2 }
0x1019   :  { %v3339_v61 = vadd.f32 %v1324_v59, %v1323_v60 }
0x101b   :  { %1402 = vrot.lane.b32.xlu1 %v3339_v61, %s2959_s2 }
0x1089   :  { %v1328_v62 = vpop.permute.xlu0 %1327 }
0x108a   :  { %2520 = vmatmul.mubr.msk.f32.vlgmr.msra.gmra.mrb[8].mxu1 %vm94_vm0, %v1328_v62 }
0x108b   :  { %2669 = vmatpush3.bf16.msra.mxu1 %v3090_v1  ;;  %2541 = vmatprep.mubr.msk.f32.mxu1 %vm2961_vm1, %v2956_v0 }
0x108c   :  { %2670 = vmatprep.subr.bf16.mxu1 %v2960_v63 }
0x108d   :  { %v1403_v53 = vpop.permute.xlu1 %1402 }
0x108e   :  { %2531 = vmatmul.mubr.msk.f32.vlgmr.msra.gmra.mrb[12].mxu0 %vm94_vm0, %v1403_v53 }
0x108f   :  { %2675 = vmatpush3.bf16.msra.mxu0 %v3090_v1  ;;  %2672 = vmatpush3.bf16.msra.mxu1 %v3099_v3 }
0x1090   :  { %2676 = vmatprep.subr.bf16.mxu0 %v2960_v63  ;;  %2552 = vmatprep.mubr.msk.f32.mxu0 %vm2961_vm1, %v2956_v0 }
0x1091   :  { %2679 = vmatprep.subr.bf16.mxu1 %v2960_v63 }
0x1093   :  { %2678 = vmatpush3.bf16.msra.mxu0 %v3099_v3 }
0x1094   :  { %2685 = vmatprep.subr.bf16.mxu0 %v2960_v63 }
0x115d   :  { %v1397_v54 = vpop.f32.mrb[8].mxu1 }
0x115e   :  { %v1398_v4 = vadd.f32 %v3136_v24, %v1397_v54  ;;  %v2521_v5 = vpop.f32.mrb[9].mxu1 }
0x1160   :  { %1500 = vperm.xlu0 %2744, %v1398_v4  }
0x1161   :  { %v1472_v6 = vpop.f32.mrb[12].mxu0 }
0x1162   :  { %v1473_v7 = vadd.f32 %v3136_v24, %v1472_v6  ;;  %v2532_v9 = vpop.f32.mrb[13].mxu0 }
0x1164   :  { %1545 = vperm.xlu1 %2745, %v1473_v7   ;;  %2747 = vset.pattern.permute.xlu0 %v2963_v31 }
0x1165   :  { %1555 = vperm.xlu0 %2747, %v1473_v7  }
0x1168   :  { %2746 = vset.pattern.permute.xlu1 %v2963_v31 }
0x1169   :  { %1510 = vperm.xlu1 %2746, %v1398_v4   ;;  %2748 = vset.pattern.permute.xlu0 %v2962_v23 }
0x116d   :  { %2749 = vset.pattern.permute.xlu1 %v2962_v23 }
0x11df   :  { %v1501_v10 = vpop.permute.xlu0 %1500 }
0x11e0   :  { %v1503_v11 = vmul.f32 %v3366_v12, %v1501_v10 }
0x11e2   :  { %1505 = vrot.lane.b32.xlu1 %v1503_v11, %s2957_s14 }
0x11e3   :  { %v1546_v16 = vpop.permute.xlu1 %1545 }
0x11e4   :  { %v1548_v18 = vmul.f32 %v3366_v12, %v1546_v16  ;;  %v1556_v21 = vpop.permute.xlu0 %1555 }
0x11e5   :  { %v1558_v13 = vmul.f32 %v3375_v22, %v1556_v21 }
0x11e6   :  { %1550 = vrot.lane.b32.xlu1 %v1548_v18, %s2957_s14 }
0x11e8   :  { %v1511_v26 = vpop.permute.xlu1 %1510 }
0x11e9   :  { %v1513_v27 = vmul.f32 %v3375_v22, %v1511_v26 }
0x11ea   :  { %1560 = vrot.lane.b32.xlu1 %v1558_v13, %s2957_s14 }
0x11eb   :  { %1515 = vrot.lane.b32.xlu0 %v1513_v27, %s2957_s14 }
0x11ee   :  { %1489 = vrot.lane.b32.xlu1 %v1473_v7, %s2957_s14 }
0x11ef   :  { %1477 = vrot.lane.b32.xlu0 %v1398_v4, %s2957_s14 }
0x11f2   :  { %1571 = vrot.lane.b32.xlu1 %v1473_v7, %s2958_s17 }
0x11f3   :  { %1526 = vrot.lane.b32.xlu0 %v1398_v4, %s2958_s17 }
0x1254   :  { %v1506_v28 = vpop.permute.xlu1 %1505 }
0x1255   :  { %v1508_v37 = vadd.f32 %v1506_v28, %v3077_v33 }
0x1258   :  { %v1551_v30 = vpop.permute.xlu1 %1550 }
0x1259   :  { %v1553_v34 = vadd.f32 %v1551_v30, %v3080_v35 }
0x125c   :  { %v1561_v32 = vpop.permute.xlu1 %1560 }
0x125d   :  { %v1516_v36 = vpop.permute.xlu0 %1515  ;;  %v1563_v38 = vadd.f32 %v1561_v32, %v1553_v34 }
0x125e   :  { %v1518_v39 = vadd.f32 %v1516_v36, %v1508_v37 }
0x1260   :  { %v3387_v42 = vpop.permute.xlu1 %1489 }
0x1261   :  { %v1564_v14 = vadd.f32 %v1563_v38, %v3387_v42  ;;  %v3390_v20 = vpop.permute.xlu0 %1477 }
0x1262   :  { %v1519_v44 = vadd.f32 %v1518_v39, %v3390_v20 }
0x1263   :  { %v2332_v45 = vmul.f32 -1.442695, %v1564_v14 }
0x1264   :  { %v2331_v47 = vmul.f32 -1.442695, %v1519_v44  ;;  %v1572_v51 = vpop.permute.xlu1 %1571 }
0x1265   :  { %2816 = vpow2.f32 %v2332_v45  ;;  %v1527_v43 = vpop.permute.xlu0 %1526 }
0x1266   :  { %2818 = vpow2.f32 %v2331_v47 }
0x126f   :  { %v2817_v40 = vpop.eup %2816 }
0x1270   :  { %v2819_v41 = vpop.eup %2818  ;;  %v1568_v48 = vadd.f32 1.0, %v2817_v40 }
0x1271   :  { %v1523_v49 = vadd.f32 1.0, %v2819_v41 }
0x1272   :  { %2820 = vrcp.f32 %v1568_v48 }
0x1273   :  { %2822 = vrcp.f32 %v1523_v49 }
0x127c   :  { %v2821_v50 = vpop.eup %2820 }
0x127d   :  { %v2823_v55 = vpop.eup %2822  ;;  %v1574_v56 = vmul.f32 %v2821_v50, %v1572_v51  ;;  %v1581_v4 = vsub.f32 1.0, %v2821_v50  ;;  %v1587_v7 = vmul.f32 %v2821_v50, %v3339_v61 }
0x127e   :  { %v1529_v57 = vmul.f32 %v2823_v55, %v1527_v43  ;;  %v1536_v6 = vsub.f32 1.0, %v2823_v55  ;;  %v1542_v11 = vmul.f32 %v2823_v55, %v3334_v46 }
0x127f   :  { %1576 = vrot.lane.b32.xlu1 %v1574_v56, %s2959_s2 }
0x1280   :  { %1531 = vrot.lane.b32.xlu0 %v1529_v57, %s2959_s2 }
0x12f1   :  { %v1577_v58 = vpop.permute.xlu1 %1576 }
0x12f2   :  { %v1579_v59 = vadd.f32 %v1577_v58, %v1563_v38  ;;  %v1532_v60 = vpop.permute.xlu0 %1531 }
0x12f3   :  { %v1534_v62 = vadd.f32 %v1532_v60, %v1518_v39 }
0x12f4   :  { %2824 = vtanh.f32 %v1579_v59 }
0x12f5   :  { %2826 = vtanh.f32 %v1534_v62 }
0x12fe   :  { %v2825_v53 = vpop.eup %2824 }
0x12ff   :  { %v2827_v54 = vpop.eup %2826  ;;  %1583 = vrot.lane.b32.xlu1 %v2825_v53, %s2958_s17 }
0x1300   :  { %1538 = vrot.lane.b32.xlu0 %v2827_v54, %s2958_s17 }
0x1371   :  { %v1584_v5 = vpop.permute.xlu1 %1583 }
0x1372   :  { %v1586_v9 = vmul.f32 %v1584_v5, %v1581_v4  ;;  %v1539_v10 = vpop.permute.xlu0 %1538 }
0x1373   :  { %v1541_v16 = vmul.f32 %v1539_v10, %v1536_v6 }
0x1374   :  { %v3399_v18 = vadd.f32 %v1587_v7, %v1586_v9 }
0x1375   :  { %v3401_v21 = vadd.f32 %v1542_v11, %v1541_v16 }
0x1376   :  { %1665 = vrot.lane.b32.xlu1 %v3399_v18, %s2959_s2 }
0x1377   :  { %1590 = vrot.lane.b32.xlu0 %v3401_v21, %s2959_s2 }
0x13e8   :  { %v1666_v13 = vpop.permute.xlu1 %1665 }
0x13e9   :  { %2553 = vmatmul.mubr.msk.f32.vlgmr.msra.gmra.mrb[14].mxu0 %vm94_vm0, %v1666_v13  ;;  %v1591_v26 = vpop.permute.xlu0 %1590 }
0x13ea   :  { %2542 = vmatmul.mubr.msk.f32.vlgmr.msra.gmra.mrb[10].mxu1 %vm94_vm0, %v1591_v26  ;;  %2687 = vmatpush3.bf16.msra.mxu0 %v3090_v1 }
0x13eb   :  { %2681 = vmatpush3.bf16.msra.mxu1 %v3090_v1  ;;  %2563 = vmatprep.mubr.msk.f32.mxu1 %vm2961_vm1, %v2956_v0 }
0x13ec   :  { %2682 = vmatprep.subr.bf16.mxu1 %v2960_v63  ;;  %2688 = vmatprep.subr.bf16.mxu0 %v2960_v63 }
0x13ed   :  { %2574 = vmatprep.mubr.msk.f32.mxu0 %vm2961_vm1, %v2956_v0 }
0x13ee   :  { %2690 = vmatpush3.bf16.msra.mxu0 %v3099_v3 }
0x13ef   :  { %2684 = vmatpush3.bf16.msra.mxu1 %v3099_v3  ;;  %2697 = vmatprep.subr.bf16.mxu0 %v2960_v63 }
0x13f0   :  { %2691 = vmatprep.subr.bf16.mxu1 %v2960_v63 }
0x14bc   :  { %v1735_v46 = vpop.f32.mrb[14].mxu0 }
0x14bd   :  { %v1736_v61 = vadd.f32 %v3136_v24, %v1735_v46  ;;  %v1660_v27 = vpop.f32.mrb[10].mxu1  ;;  %v2554_v28 = vpop.f32.mrb[15].mxu0 }
0x14be   :  { %v1661_v30 = vadd.f32 %v3136_v24, %v1660_v27  ;;  %v2543_v32 = vpop.f32.mrb[11].mxu1 }
0x14bf   :  { %1808 = vperm.xlu1 %2749, %v1736_v61  }
0x14c0   :  { %1763 = vperm.xlu0 %2748, %v1661_v30  }
0x14c3   :  { %2750 = vset.pattern.permute.xlu1 %v2963_v31 }
0x14c4   :  { %1773 = vperm.xlu1 %2750, %v1661_v30   ;;  %2751 = vset.pattern.permute.xlu0 %v2963_v31 }
0x14c5   :  { %1818 = vperm.xlu0 %2751, %v1736_v61  }
0x14c8   :  { %2753 = vset.pattern.permute.xlu1 %v2962_v23 }
0x14c9   :  { %2752 = vset.pattern.permute.xlu0 %v2962_v23 }
0x153e   :  { %v1809_v34 = vpop.permute.xlu1 %1808 }
0x153f   :  { %v1764_v36 = vpop.permute.xlu0 %1763  ;;  %v1811_v38 = vmul.f32 %v3366_v12, %v1809_v34 }
0x1540   :  { %v1766_v37 = vmul.f32 %v3366_v12, %v1764_v36 }
0x1542   :  { %1768 = vrot.lane.b32.xlu1 %v1766_v37, %s2957_s14 }
0x1543   :  { %v1774_v24 = vpop.permute.xlu1 %1773 }
0x1544   :  { %v1776_v39 = vmul.f32 %v3375_v22, %v1774_v24  ;;  %v1819_v14 = vpop.permute.xlu0 %1818 }
0x1545   :  { %v1821_v44 = vmul.f32 %v3375_v22, %v1819_v14  ;;  %v3476_v14 = vld [vmem:[%s3576_s5] ss:$0 sm:$0xff]  ;;  %s2966_s5 = smov 6  }
0x1546   :  { %1778 = vrot.lane.b32.xlu0 %v1776_v39, %s2957_s14  ;;  %1813 = vrot.lane.b32.xlu1 %v1811_v38, %s2957_s14 }
0x154a   :  { %1740 = vrot.lane.b32.xlu0 %v1661_v30, %s2957_s14  ;;  %1823 = vrot.lane.b32.xlu1 %v1821_v44, %s2957_s14 }
0x154e   :  { %1789 = vrot.lane.b32.xlu0 %v1661_v30, %s2958_s17  ;;  %1752 = vrot.lane.b32.xlu1 %v1736_v61, %s2957_s14 }
0x1552   :  { %1834 = vrot.lane.b32.xlu1 %v1736_v61, %s2958_s17 }
0x15b4   :  { %v1769_v23 = vpop.permute.xlu1 %1768 }
0x15b5   :  { %v1771_v40 = vadd.f32 %v1769_v23, %v3077_v33 }
0x15b8   :  { %v1814_v45 = vpop.permute.xlu1 %1813  ;;  %v1779_v47 = vpop.permute.xlu0 %1778 }
0x15b9   :  { %v1781_v41 = vadd.f32 %v1779_v47, %v1771_v40  ;;  %v1816_v50 = vadd.f32 %v1814_v45, %v3080_v35 }
0x15bc   :  { %v1824_v48 = vpop.permute.xlu1 %1823  ;;  %v3440_v49 = vpop.permute.xlu0 %1740 }
0x15bd   :  { %v1782_v51 = vadd.f32 %v1781_v41, %v3440_v49  ;;  %v1826_v55 = vadd.f32 %v1824_v48, %v1816_v50 }
0x15bf   :  { %v2335_v56 = vmul.f32 -1.442695, %v1782_v51 }
0x15c0   :  { %v3444_v43 = vpop.permute.xlu1 %1752  ;;  %v1790_v4 = vpop.permute.xlu0 %1789 }
0x15c1   :  { %2828 = vpow2.f32 %v2335_v56  ;;  %v1827_v57 = vadd.f32 %v1826_v55, %v3444_v43 }
0x15c3   :  { %v2336_v58 = vmul.f32 -1.442695, %v1827_v57 }
0x15c4   :  { %v1835_v7 = vpop.permute.xlu1 %1834 }
0x15c5   :  { %2830 = vpow2.f32 %v2336_v58 }
0x15cb   :  { %v2829_v59 = vpop.eup %2828 }
0x15cc   :  { %v1786_v60 = vadd.f32 1.0, %v2829_v59 }
0x15ce   :  { %2832 = vrcp.f32 %v1786_v60 }
0x15cf   :  { %v2831_v62 = vpop.eup %2830 }
0x15d0   :  { %v1831_v53 = vadd.f32 1.0, %v2831_v62 }
0x15d2   :  { %2834 = vrcp.f32 %v1831_v53 }
0x15d8   :  { %v2833_v54 = vpop.eup %2832 }
0x15d9   :  { %v1792_v5 = vmul.f32 %v2833_v54, %v1790_v4  ;;  %v1799_v61 = vsub.f32 1.0, %v2833_v54  ;;  %v1805_v28 = vmul.f32 %v2833_v54, %v3401_v21 }
0x15db   :  { %1794 = vrot.lane.b32.xlu0 %v1792_v5, %s2959_s2 }
0x15dc   :  { %v2835_v6 = vpop.eup %2834 }
0x15dd   :  { %v1837_v9 = vmul.f32 %v2835_v6, %v1835_v7  ;;  %v1844_v34 = vsub.f32 1.0, %v2835_v6  ;;  %v1850_v37 = vmul.f32 %v2835_v6, %v3399_v18 }
0x15df   :  { %1839 = vrot.lane.b32.xlu1 %v1837_v9, %s2959_s2 }
0x164d   :  { %v1795_v10 = vpop.permute.xlu0 %1794 }
0x164e   :  { %v1797_v11 = vadd.f32 %v1795_v10, %v1781_v41 }
0x1650   :  { %2836 = vtanh.f32 %v1797_v11 }
0x1651   :  { %v1840_v16 = vpop.permute.xlu1 %1839 }
0x1652   :  { %v1842_v13 = vadd.f32 %v1840_v16, %v1826_v55 }
0x1654   :  { %2838 = vtanh.f32 %v1842_v13 }
0x165a   :  { %v2837_v26 = vpop.eup %2836 }
0x165b   :  { %1801 = vrot.lane.b32.xlu0 %v2837_v26, %s2958_s17 }
0x165e   :  { %v2839_v46 = vpop.eup %2838 }
0x165f   :  { %1846 = vrot.lane.b32.xlu1 %v2839_v46, %s2958_s17 }
0x16cd   :  { %v1802_v27 = vpop.permute.xlu0 %1801 }
0x16ce   :  { %v1804_v30 = vmul.f32 %v1802_v27, %v1799_v61 }
0x16d0   :  { %v3452_v32 = vadd.f32 %v1805_v28, %v1804_v30 }
0x16d1   :  { %v1847_v36 = vpop.permute.xlu1 %1846 }
0x16d2   :  { %v1849_v24 = vmul.f32 %v1847_v36, %v1844_v34  ;;  %1853 = vrot.lane.b32.xlu0 %v3452_v32, %s2959_s2 }
0x16d4   :  { %v3457_v38 = vadd.f32 %v1850_v37, %v1849_v24 }
0x16d6   :  { %1928 = vrot.lane.b32.xlu1 %v3457_v38, %s2959_s2 }
0x1744   :  { %v1854_v39 = vpop.permute.xlu0 %1853 }
0x1745   :  { %2564 = vmatmul.mubr.msk.f32.vlgmr.msra.gmra.mrb[12].mxu1 %vm94_vm0, %v1854_v39 }
0x1746   :  { %2693 = vmatpush3.bf16.msra.mxu1 %v3090_v1  ;;  %2585 = vmatprep.mubr.msk.f32.mxu1 %vm2961_vm1, %v2956_v0 }
0x1747   :  { %2694 = vmatprep.subr.bf16.mxu1 %v2960_v63 }
0x1748   :  { %v1929_v18 = vpop.permute.xlu1 %1928 }
0x1749   :  { %2575 = vmatmul.mubr.msk.f32.vlgmr.msra.gmra.mrb[16].mxu0 %vm94_vm0, %v1929_v18 }
0x174a   :  { %2699 = vmatpush3.bf16.msra.mxu0 %v3090_v1  ;;  %2696 = vmatpush3.bf16.msra.mxu1 %v3099_v3 }
0x174b   :  { %2700 = vmatprep.subr.bf16.mxu0 %v2960_v63  ;;  %2596 = vmatprep.mubr.msk.f32.mxu0 %vm2961_vm1, %v2956_v0 }
0x174e   :  { %2702 = vmatpush3.bf16.msra.mxu0 %v3099_v3 }
0x1818   :  { %v1923_v21 = vpop.f32.mrb[12].mxu1 }
0x1819   :  { %v1924_v44 = vadd.f32 %v3476_v14, %v1923_v21  ;;  %v2565_v23 = vpop.f32.mrb[13].mxu1 }
0x181b   :  { %2026 = vperm.xlu0 %2752, %v1924_v44  }
0x181c   :  { %v1998_v1 = vpop.f32.mrb[16].mxu0 }
0x181d   :  { %v1999_v45 = vadd.f32 %v3476_v14, %v1998_v1  ;;  %v2576_v47 = vpop.f32.mrb[17].mxu0 }
0x181f   :  { %2071 = vperm.xlu1 %2753, %v1999_v45   ;;  %2755 = vset.pattern.permute.xlu0 %v2963_v31 }
0x1820   :  { %2081 = vperm.xlu0 %2755, %v1999_v45  }
0x1823   :  { %2754 = vset.pattern.permute.xlu1 %v2963_v31 }
0x1824   :  { %2036 = vperm.xlu1 %2754, %v1924_v44  }
0x189a   :  { %v2027_v0 = vpop.permute.xlu0 %2026 }
0x189b   :  { %v2029_v63 = vmul.f32 %v3366_v12, %v2027_v0 }
0x189d   :  { %2031 = vrot.lane.b32.xlu1 %v2029_v63, %s2957_s14 }
0x189e   :  { %v2072_v3 = vpop.permute.xlu1 %2071 }
0x189f   :  { %v2074_v40 = vmul.f32 %v3366_v12, %v2072_v3  ;;  %v2082_v41 = vpop.permute.xlu0 %2081 }
0x18a0   :  { %v2084_v48 = vmul.f32 %v3375_v22, %v2082_v41  ;;  %v691_v41 = vmax.f32 %v3158_v52, %v3214_v2 }
0x18a1   :  { %2076 = vrot.lane.b32.xlu1 %v2074_v40, %s2957_s14 }
0x18a3   :  { %v2037_v50 = vpop.permute.xlu1 %2036 }
0x18a4   :  { %v2039_v51 = vmul.f32 %v3375_v22, %v2037_v50 }
0x18a5   :  { %2086 = vrot.lane.b32.xlu1 %v2084_v48, %s2957_s14 }
0x18a6   :  { %2041 = vrot.lane.b32.xlu0 %v2039_v51, %s2957_s14 }
0x18a9   :  { %2015 = vrot.lane.b32.xlu1 %v1999_v45, %s2957_s14 }
0x18aa   :  { %2003 = vrot.lane.b32.xlu0 %v1924_v44, %s2957_s14 }
0x18ad   :  { %2097 = vrot.lane.b32.xlu1 %v1999_v45, %s2958_s17 }
0x18ae   :  { %2052 = vrot.lane.b32.xlu0 %v1924_v44, %s2958_s17 }
0x190f   :  { %v2032_v31 = vpop.permute.xlu1 %2031 }
0x1910   :  { %v2034_v22 = vadd.f32 %v2032_v31, %v3077_v33  ;;  %v966_v31 = vmax.f32 %v3158_v52, %v3269_v15 }
0x1912   :  { %v967_v2 = vmin.f32 %v3161_v19, %v966_v31 }
0x1913   :  { %v2077_v12 = vpop.permute.xlu1 %2076 }
0x1914   :  { %v2079_v56 = vadd.f32 %v2077_v12, %v3080_v35  ;;  %v954_v12 = vmax.f32 %v3158_v52, %v3272_v17  ;;  %v1492_v17 = vmax.f32 %v3158_v52, %v3387_v42 }
0x1917   :  { %v2087_v55 = vpop.permute.xlu1 %2086 }
0x1918   :  { %v2042_v57 = vpop.permute.xlu0 %2041  ;;  %v2089_v58 = vadd.f32 %v2087_v55, %v2079_v56  ;;  %v955_v55 = vmin.f32 %v3161_v19, %v954_v12  ;;  %v1217_v56 = vmax.f32 %v3158_v52, %v3322_v25  ;;  %v1755_v25 = vmax.f32 %v3158_v52, %v3444_v43 }
0x1919   :  { %v2044_v59 = vadd.f32 %v2042_v57, %v2034_v22  ;;  %v1480_v22 = vmax.f32 %v3158_v52, %v3390_v20 }
0x191a   :  { %v1218_v57 = vmin.f32 %v3161_v19, %v1217_v56  ;;  %v1756_v42 = vmin.f32 %v3161_v19, %v1755_v25 }
0x191b   :  { %v3496_v60 = vpop.permute.xlu1 %2015 }
0x191c   :  { %v2090_v62 = vadd.f32 %v2089_v58, %v3496_v60  ;;  %v3499_v53 = vpop.permute.xlu0 %2003  ;;  %v2018_v20 = vmax.f32 %v3158_v52, %v3496_v60 }
0x191d   :  { %v2045_v54 = vadd.f32 %v2044_v59, %v3499_v53 }
0x191e   :  { %v2340_v4 = vmul.f32 -1.442695, %v2090_v62  ;;  %v2019_v43 = vmin.f32 %v3161_v19, %v2018_v20 }
0x191f   :  { %v2339_v5 = vmul.f32 -1.442695, %v2045_v54  ;;  %v2098_v10 = vpop.permute.xlu1 %2097  ;;  %v2006_v54 = vmax.f32 %v3158_v52, %v3499_v53 }
0x1920   :  { %2840 = vpow2.f32 %v2340_v4  ;;  %v2053_v13 = vpop.permute.xlu0 %2052 }
0x1921   :  { %2842 = vpow2.f32 %v2339_v5 }
0x192a   :  { %v2841_v6 = vpop.eup %2840 }
0x192b   :  { %v2843_v7 = vpop.eup %2842  ;;  %v2094_v35 = vadd.f32 1.0, %v2841_v6 }
0x192c   :  { %v2049_v9 = vadd.f32 1.0, %v2843_v7 }
0x192d   :  { %2844 = vrcp.f32 %v2094_v35 }
0x192e   :  { %2846 = vrcp.f32 %v2049_v9 }
0x1937   :  { %v2845_v33 = vpop.eup %2844 }
0x1938   :  { %v2847_v11 = vpop.eup %2846  ;;  %v2100_v16 = vmul.f32 %v2845_v33, %v2098_v10  ;;  %v2107_v36 = vsub.f32 1.0, %v2845_v33  ;;  %v2113_v39 = vmul.f32 %v2845_v33, %v3457_v38  ;;  %v703_v38 = vmax.f32 %v3158_v52, %v3218_v8 }
0x1939   :  { %v2055_v26 = vmul.f32 %v2847_v11, %v2053_v13  ;;  %v2062_v24 = vsub.f32 1.0, %v2847_v11  ;;  %v2068_v44 = vmul.f32 %v2847_v11, %v3452_v32  ;;  %v692_v8 = vmin.f32 %v3161_v19, %v691_v41 }
0x193a   :  { %2102 = vrot.lane.b32.xlu1 %v2100_v16, %s2959_s2  ;;  %v704_v51 = vmin.f32 %v3161_v19, %v703_v38 }
0x193b   :  { %2057 = vrot.lane.b32.xlu0 %v2055_v26, %s2959_s2 }
0x19ac   :  { %v2103_v46 = vpop.permute.xlu1 %2102 }
0x19ad   :  { %v2105_v61 = vadd.f32 %v2103_v46, %v2089_v58  ;;  %v2058_v27 = vpop.permute.xlu0 %2057  ;;  %v1481_v58 = vmin.f32 %v3161_v19, %v1480_v22 }
0x19ae   :  { %v2060_v28 = vadd.f32 %v2058_v27, %v2044_v59  ;;  %v1743_v59 = vmax.f32 %v3158_v52, %v3440_v49  ;;  %v2007_v49 = vmin.f32 %v3161_v19, %v2006_v54 }
0x19af   :  { %2848 = vtanh.f32 %v2105_v61 }
0x19b0   :  { %2850 = vtanh.f32 %v2060_v28  ;;  %v1744_v62 = vmin.f32 %v3161_v19, %v1743_v59 }
0x19b9   :  { %v2849_v30 = vpop.eup %2848 }
0x19ba   :  { %v2851_v34 = vpop.eup %2850  ;;  %2109 = vrot.lane.b32.xlu1 %v2849_v30, %s2958_s17 }
0x19bb   :  { %2064 = vrot.lane.b32.xlu0 %v2851_v34, %s2958_s17 }
0x1a2c   :  { %v2110_v37 = vpop.permute.xlu1 %2109 }
0x1a2d   :  { %v2112_v18 = vmul.f32 %v2110_v37, %v2107_v36  ;;  %v2065_v21 = vpop.permute.xlu0 %2064 }
0x1a2e   :  { %v2067_v23 = vmul.f32 %v2065_v21, %v2062_v24 }
0x1a2f   :  { %v2114_v1 = vadd.f32 %v2113_v39, %v2112_v18 }
0x1a30   :  { %v2069_v45 = vadd.f32 %v2068_v44, %v2067_v23 }
0x1a31   :  { %2191 = vrot.lane.b32.xlu1 %v2114_v1, %s2959_s2 }
0x1a32   :  { %2116 = vrot.lane.b32.xlu0 %v2069_v45, %s2959_s2 }
0x1aa3   :  { %v2192_v47 = vpop.permute.xlu1 %2191 }
0x1aa4   :  { %2597 = vmatmul.mubr.msk.f32.vlgmr.msra.gmra.mrb[18].mxu0 %vm94_vm0, %v2192_v47  ;;  %v2117_v0 = vpop.permute.xlu0 %2116 }
0x1aa5   :  { %2586 = vmatmul.mubr.msk.f32.vlgmr.msra.gmra.mrb[14].mxu1 %vm94_vm0, %v2117_v0 }
0x1b77   :  { %v2261_v63 = vpop.f32.mrb[18].mxu0 }
0x1b78   :  { %v2262_v3 = vadd.f32 %v3476_v14, %v2261_v63  ;;  %v2186_v32 = vpop.f32.mrb[14].mxu1  ;;  %v2598_v40 = vpop.f32.mrb[19].mxu0 }
0x1b79   :  { %v2187_v48 = vadd.f32 %v3476_v14, %v2186_v32  ;;  %v2587_v50 = vpop.f32.mrb[15].mxu1  ;;  %v1229_v14 = vmax.f32 %v3158_v52, %v3326_v29  ;;  %v1493_v29 = vmin.f32 %v3161_v19, %v1492_v17 }
0x1b7a   :  { %2278 = vrot.lane.b32.xlu1 %v2262_v3, %s2957_s14 }
0x1b7b   :  { %2266 = vrot.lane.b32.xlu0 %v2187_v48, %s2957_s14  ;;  %v1230_v15 = vmin.f32 %v3161_v19, %v1229_v14 }
0x1b7e   :  { %706 = vrot.lane.b32.xlu1 %v704_v51, %s2966_s5 }
0x1b7f   :  { %694 = vrot.lane.b32.xlu0 %v692_v8, %s2966_s5 }
0x1b82   :  { %969 = vrot.lane.b32.xlu1 %v967_v2, %s2967_s26 }
0x1b83   :  { %957 = vrot.lane.b32.xlu0 %v955_v55, %s2967_s26 }
0x1b86   :  { %1232 = vrot.lane.b32.xlu1 %v1230_v15, %s2968_s27 }
0x1b87   :  { %1220 = vrot.lane.b32.xlu0 %v1218_v57, %s2968_s27 }
0x1b8a   :  { %1495 = vrot.lane.b32.xlu1 %v1493_v29, %s2969_s28 }
0x1b8b   :  { %1483 = vrot.lane.b32.xlu0 %v1481_v58, %s2969_s28 }
0x1b8e   :  { %1758 = vrot.lane.b32.xlu1 %v1756_v42, %s2970_s29 }
0x1b8f   :  { %1746 = vrot.lane.b32.xlu0 %v1744_v62, %s2970_s29 }
0x1b92   :  { %2021 = vrot.lane.b32.xlu1 %v2019_v43, %s2971_s30 }
0x1b93   :  { %2009 = vrot.lane.b32.xlu0 %v2007_v49, %s2971_s30 }
0x1bec   :  { %v2279_v4 = vpop.permute.xlu1 %2278 }
0x1bed   :  { %v2281_v5 = vmax.f32 %v3158_v52, %v2279_v4  ;;  %v2267_v6 = vpop.permute.xlu0 %2266 }
0x1bee   :  { %v2269_v60 = vmax.f32 %v3158_v52, %v2267_v6 }
0x1bef   :  { %v2282_v7 = vmin.f32 %v3161_v19, %v2281_v5 }
0x1bf0   :  { %v2270_v53 = vmin.f32 %v3161_v19, %v2269_v60  ;;  %v707_v35 = vpop.permute.xlu1 %706 }
0x1bf1   :  { %709 = vst.msk [vmem:[#allocation8 + $0x8] sm:$0xff] %vm697_vm7, %v707_v35  ;;  %2284 = vrot.lane.b32.xlu1 %v2282_v7, %s2972_s7  ;;  %v695_v9 = vpop.permute.xlu0 %694 }
0x1bf2   :  { %698 = vst.msk [vmem:[#allocation8] sm:$0xff] %vm697_vm7, %v695_v9  ;;  %2272 = vrot.lane.b32.xlu0 %v2270_v53, %s2972_s7 }
0x1bf4   :  { %v970_v33 = vpop.permute.xlu1 %969 }
0x1bf5   :  { %972 = vst.msk [vmem:[#allocation8 + $0x8] sm:$0xff] %vm960_vm8, %v970_v33  ;;  %v958_v10 = vpop.permute.xlu0 %957 }
0x1bf6   :  { %961 = vst.msk [vmem:[#allocation8] sm:$0xff] %vm960_vm8, %v958_v10 }
0x1bf8   :  { %v1233_v11 = vpop.permute.xlu1 %1232 }
0x1bf9   :  { %1235 = vst.msk [vmem:[#allocation8 + $0x8] sm:$0xff] %vm1223_vm9, %v1233_v11  ;;  %v1221_v52 = vpop.permute.xlu0 %1220 }
0x1bfa   :  { %1224 = vst.msk [vmem:[#allocation8] sm:$0xff] %vm1223_vm9, %v1221_v52 }
0x1bfc   :  { %v1496_v16 = vpop.permute.xlu1 %1495 }
0x1bfd   :  { %1498 = vst.msk [vmem:[#allocation8 + $0x8] sm:$0xff] %vm1486_vm10, %v1496_v16  ;;  %v1484_v19 = vpop.permute.xlu0 %1483 }
0x1bfe   :  { %1487 = vst.msk [vmem:[#allocation8] sm:$0xff] %vm1486_vm10, %v1484_v19 }
0x1c00   :  { %v1759_v13 = vpop.permute.xlu1 %1758 }
0x1c01   :  { %1761 = vst.msk [vmem:[#allocation8 + $0x8] sm:$0xff] %vm1749_vm11, %v1759_v13  ;;  %v1747_v26 = vpop.permute.xlu0 %1746 }
0x1c02   :  { %1750 = vst.msk [vmem:[#allocation8] sm:$0xff] %vm1749_vm11, %v1747_v26 }
0x1c04   :  { %v2022_v46 = vpop.permute.xlu1 %2021 }
0x1c05   :  { %2024 = vst.msk [vmem:[#allocation8 + $0x8] sm:$0xff] %vm2012_vm12, %v2022_v46  ;;  %v2010_v61 = vpop.permute.xlu0 %2009 }
0x1c06   :  { %2013 = vst.msk [vmem:[#allocation8] sm:$0xff] %vm2012_vm12, %v2010_v61 }
0x1c63   :  { %v2285_v27 = vpop.permute.xlu1 %2284 }
0x1c64   :  { %v2273_v28 = vpop.permute.xlu0 %2272  ;;  %2287 = vst.msk [vmem:[#allocation8 + $0x8] sm:$0xff] %vm2275_vm13, %v2285_v27 }
0x1c65   :  { %2276 = vst.msk [vmem:[#allocation8] sm:$0xff] %vm2275_vm13, %v2273_v28 }
0x1c66   :  { %2932 = shalt.err (!%p2929_p0)
}
0x1c67   :  { %s2933_s11 = scalar_lea.hbm %s3577_s6, 256 }
0x1c68   :  { %p2934_p1 = scmp.ne.s32.totalorder %s3577_s6, %s2933_s11  ;;  %p2937_p2 = scmp.lt.u32.totalorder %s2933_s11, %s3577_s6 }
0x1c6a   :  { %p2939_p3 = pnand %p2937_p2, %p2934_p1 }
0x1c6c   :  { %2942 = shalt.err (!%p2939_p3)
}
0x1c6d   :  { %2299 = dma.vmem_to_hbm [thread:$0]  %s2294_s9, 256, %s3577_s6, [#allocation4], %s2953_s1, %s2953_s1, %s2954_s21  }
0x1c6e   :  { %2947 = dma.done.wait [#allocation4], 256  }
0x1c6f   :  { %2948 = vsyncadd [#allocation4], 4294967040 }
0x1c70   :  { %2303 = vsyncpa [#allocation3], 1 }
0x1c71   :  { %2304 = vsyncpa [#allocation6], 1 }
0x1c72   :  { %2305 = vsyncpa [#allocation4], 1 }

</bundles_post_ra>
